<compile_context>
chip_gen: v7x
topology: tpu7x:2x2x1
jax: 0.10.0
libtpu: 0.0.40
codegen_flags: <defaults>
</compile_context>

<pallas_src>
import functools

import jax
import jax.numpy as jnp
from jax.experimental import pallas as pl
from jax.experimental.pallas import tpu as pltpu

# -----------------------------------------------------------------------------
# Feature dims (stand-ins for len(VLT_FEA), len(SF_FEA), len(CAT_FEA_HOT),
# len(MORE_FEA), len(IS_FEA) in the reference code).
# -----------------------------------------------------------------------------
VLT_DIM, SF_DIM, CAT_DIM, OTH_DIM, IS_DIM = 8, 6, 4, 3, 2

# Packed-activation layout: [vlt | sf | cat | oth | is]
VLT_OFF = 0
SF_OFF = VLT_OFF + VLT_DIM
CAT_OFF = SF_OFF + SF_DIM
OTH_OFF = CAT_OFF + CAT_DIM
IS_OFF = OTH_OFF + OTH_DIM
TOT_DIM = IS_OFF + IS_DIM          # 23

HID = [[100, 120], [30, 30], [1, 1], 100, 30]
H00, H01 = HID[0]                  # 100, 120
H10, H11 = HID[1]                  # 30, 30
H3, H4 = HID[3], HID[4]            # 100, 30
OUT_DIM = 1
OUT_PACK = 8                       # packed output lanes: [x, o_vlt, o_sf, 0...]


def _round_up(x, m):
    return ((x + m - 1) // m) * m


# -----------------------------------------------------------------------------
# Kernel
# -----------------------------------------------------------------------------
def end2end_v5_kernel(
    x_ref,                                   # (TB, 23)       compute dtype
    wv1_ref, ws1_ref, w3ois_ref,             # (23,100),(23,120),(23,100)
    wv2_ref, ws2_ref,                        # (100,30),(120,30)
    w3a_ref, w3b_ref,                        # (30,100),(30,100)
    w4_ref,                                  # (100,30)
    small_ref,                               # (16,128) f32: biases + head rows
    out_ref,                                 # (TB, 8) f32
    *, compute_dtype,
):
    x = x_ref[...]

    # Small-parameter slab layout (see wrapper).
    bv1 = small_ref[0:1, :H00]
    bs1 = small_ref[1:2, :H01]
    b3 = small_ref[2:3, :H3]
    bv2 = small_ref[3:4, :H10]
    bs2 = small_ref[4:5, :H11]
    b4 = small_ref[5:6, :H4]
    wv3 = small_ref[6:7, :H10]
    ws3 = small_ref[7:8, :H11]
    w5 = small_ref[8:9, :H4]
    b5 = small_ref[9:10, 0:1]
    bv3 = small_ref[9:10, 1:2]
    bs3 = small_ref[9:10, 2:3]

    def dot(a, w_ref):
        return jnp.dot(a.astype(compute_dtype), w_ref[...],
                       preferred_element_type=jnp.float32)

    # ---- vlt branch: fc_vlt_1(cat[vlt,cat]) -> relu -> fc_vlt_2 -> relu -> fc_vlt_3
    x1 = jnp.maximum(dot(x, wv1_ref) + bv1, 0.0)
    x1 = jnp.maximum(dot(x1, wv2_ref) + bv2, 0.0)
    o_vlt = jnp.sum(x1 * wv3, axis=-1, keepdims=True) + bv3      # N=1 head on VPU

    # ---- sf branch: fc_sf_1(cat[sf,cat]) -> relu -> fc_sf_2 -> relu -> fc_sf_3
    x2 = jnp.maximum(dot(x, ws1_ref) + bs1, 0.0)
    x2 = jnp.maximum(dot(x2, ws2_ref) + bs2, 0.0)
    o_sf = jnp.sum(x2 * ws3, axis=-1, keepdims=True) + bs3       # N=1 head on VPU

    # ---- merge head: fc_3(cat[x1,x2,oth,is]) -> relu -> fc_4 -> relu -> fc_5
    h = jnp.maximum(
        dot(x1, w3a_ref) + dot(x2, w3b_ref) + dot(x, w3ois_ref) + b3, 0.0)
    h = jnp.maximum(dot(h, w4_ref) + b4, 0.0)
    y = jnp.sum(h * w5, axis=-1, keepdims=True) + b5             # N=1 head on VPU

    zeros = jnp.zeros((y.shape[0], OUT_PACK - 3), dtype=jnp.float32)
    out_ref[...] = jnp.concatenate([y, o_vlt, o_sf, zeros],
                                   axis=-1).astype(out_ref.dtype)


# -----------------------------------------------------------------------------
# Parameters (matches init_weights: W ~ N(0, 0.01), b = 0).  Weights stored as
# (in_features, out_features) so the math is y = x @ W + b.
# -----------------------------------------------------------------------------
def init_params(key):
    shapes = {
        "wv1": (VLT_DIM + CAT_DIM, H00),
        "wv2": (H00, H10),
        "wv3": (H10, 1),
        "ws1": (SF_DIM + CAT_DIM, H01),
        "ws2": (H01, H11),
        "ws3": (H11, 1),
        "w3": (H10 + H11 + OTH_DIM + IS_DIM, H3),
        "w4": (H3, H4),
        "w5": (H4, OUT_DIM),
    }
    params = {}
    keys = jax.random.split(key, len(shapes))
    for k, (name, shp) in zip(keys, shapes.items()):
        params[name] = 0.01 * jax.random.normal(k, shp, dtype=jnp.float32)
        params["b" + name[1:]] = jnp.zeros((1, shp[1]), dtype=jnp.float32)
    return params


# -----------------------------------------------------------------------------
# Wrapper: packs activations / weights, pads the batch, calls the kernel.
# -----------------------------------------------------------------------------
@functools.partial(jax.jit, static_argnames=("batch_tile", "compute_dtype"))
def end2end_v5_forward(params, x_vlt, x_sf, x_cat, x_oth, x_is,
                       batch_tile=256, compute_dtype=jnp.bfloat16):
    B = x_vlt.shape[0]
    tb = max(8, _round_up(min(batch_tile, B), 8))
    B_pad = _round_up(B, tb)

    # --- pack the five narrow inputs into one lane-contiguous slab (B_pad, 23)
    x_all = jnp.concatenate([x_vlt, x_sf, x_cat, x_oth, x_is], axis=1)
    x_all = jnp.pad(x_all, ((0, B_pad - B), (0, 0)))
    x_all = x_all.astype(compute_dtype)

    # --- build zero-padded (23, N) input-layer matrices: cat()+Linear == one dot
    wvlt1 = jnp.zeros((TOT_DIM, H00), jnp.float32)
    wvlt1 = wvlt1.at[VLT_OFF:VLT_OFF + VLT_DIM].set(params["wv1"][:VLT_DIM])
    wvlt1 = wvlt1.at[CAT_OFF:CAT_OFF + CAT_DIM].set(params["wv1"][VLT_DIM:])

    wsf1 = jnp.zeros((TOT_DIM, H01), jnp.float32)
    wsf1 = wsf1.at[SF_OFF:SF_OFF + SF_DIM].set(params["ws1"][:SF_DIM])
    wsf1 = wsf1.at[CAT_OFF:CAT_OFF + CAT_DIM].set(params["ws1"][SF_DIM:])

    w3 = params["w3"]
    w3a = w3[:H10]
    w3b = w3[H10:H10 + H11]
    w3ois = jnp.zeros((TOT_DIM, H3), jnp.float32)
    w3ois = w3ois.at[OTH_OFF:OTH_OFF + OTH_DIM].set(
        w3[H10 + H11:H10 + H11 + OTH_DIM])
    w3ois = w3ois.at[IS_OFF:IS_OFF + IS_DIM].set(w3[H10 + H11 + OTH_DIM:])

    mats = [m.astype(compute_dtype) for m in
            (wvlt1, wsf1, w3ois, params["wv2"], params["ws2"], w3a, w3b,
             params["w4"])]

    # --- one f32 slab for every bias + the three 1-wide head weight rows
    small = jnp.zeros((16, 128), jnp.float32)
    small = small.at[0, :H00].set(params["bv1"].reshape(-1))
    small = small.at[1, :H01].set(params["bs1"].reshape(-1))
    small = small.at[2, :H3].set(params["b3"].reshape(-1))
    small = small.at[3, :H10].set(params["bv2"].reshape(-1))
    small = small.at[4, :H11].set(params["bs2"].reshape(-1))
    small = small.at[5, :H4].set(params["b4"].reshape(-1))
    small = small.at[6, :H10].set(params["wv3"].reshape(-1))
    small = small.at[7, :H11].set(params["ws3"].reshape(-1))
    small = small.at[8, :H4].set(params["w5"].reshape(-1))
    small = small.at[9, 0].set(params["b5"].reshape(-1)[0])
    small = small.at[9, 1].set(params["bv3"].reshape(-1)[0])
    small = small.at[9, 2].set(params["bs3"].reshape(-1)[0])

    grid = (B_pad // tb,)

    in_specs = (
        [pl.BlockSpec((tb, TOT_DIM), lambda i: (i, 0))]
        + [pl.BlockSpec(m.shape, lambda i: (0, 0)) for m in mats]
        + [pl.BlockSpec((16, 128), lambda i: (0, 0))]
    )
    out_specs = pl.BlockSpec((tb, OUT_PACK), lambda i: (i, 0))
    out_shape = jax.ShapeDtypeStruct((B_pad, OUT_PACK), jnp.float32)

    kernel = functools.partial(end2end_v5_kernel, compute_dtype=compute_dtype)

    packed = pl.pallas_call(
        kernel,
        out_shape=out_shape,
        grid=grid,
        in_specs=in_specs,
        out_specs=out_specs,
        compiler_params=pltpu.CompilerParams(
            dimension_semantics=("parallel",)),
    )(x_all, *mats, small)

    packed = packed[:B]
    return packed[:, 0:1], packed[:, 1:2], packed[:, 2:3]


# -----------------------------------------------------------------------------
# References.  matmul_dtype=float32 mirrors the PyTorch module exactly;
# matmul_dtype=bfloat16 mirrors the kernel's mixed-precision policy
# (bf16 MXU inputs, f32 accumulation, f32 bias/ReLU and f32 1-wide heads).
# -----------------------------------------------------------------------------
def reference_forward(params, x_vlt, x_sf, x_cat, x_oth, x_is,
                      matmul_dtype=jnp.float32):
    def mm(a, w):
        return jnp.dot(a.astype(matmul_dtype), w.astype(matmul_dtype),
                       preferred_element_type=jnp.float32)

    def lin(a, w, b):
        return mm(a, w) + b

    x1 = jax.nn.relu(lin(jnp.concatenate([x_vlt, x_cat], 1),
                         params["wv1"], params["bv1"]))
    x1 = jax.nn.relu(lin(x1, params["wv2"], params["bv2"]))
    o_vlt = x1 @ params["wv3"] + params["bv3"]

    x2 = jax.nn.relu(lin(jnp.concatenate([x_sf, x_cat], 1),
                         params["ws1"], params["bs1"]))
    x2 = jax.nn.relu(lin(x2, params["ws2"], params["bs2"]))
    o_sf = x2 @ params["ws3"] + params["bs3"]

    h = jax.nn.relu(lin(jnp.concatenate([x1, x2, x_oth, x_is], 1),
                        params["w3"], params["b3"]))
    h = jax.nn.relu(lin(h, params["w4"], params["b4"]))
    y = h @ params["w5"] + params["b5"]
    return y, o_vlt, o_sf


def _make_inputs(key, B):
    k_vlt, k_sf, k_cat, k_oth, k_is = jax.random.split(key, 5)
    return (jax.random.normal(k_vlt, (B, VLT_DIM), dtype=jnp.float32),
            jax.random.normal(k_sf, (B, SF_DIM), dtype=jnp.float32),
            jax.random.normal(k_cat, (B, CAT_DIM), dtype=jnp.float32),
            jax.random.normal(k_oth, (B, OTH_DIM), dtype=jnp.float32),
            jax.random.normal(k_is, (B, IS_DIM), dtype=jnp.float32))


def _check(outs, params, inputs):
    mix = reference_forward(params, *inputs, matmul_dtype=jnp.bfloat16)
    f32 = reference_forward(params, *inputs, matmul_dtype=jnp.float32)
    for o, m, r in zip(outs, mix, f32):
        assert o.shape == m.shape == r.shape
        # tight vs the mixed-precision (bf16-matmul) reference
        assert jnp.allclose(o, m, atol=5e-6, rtol=1e-2), "mixed-precision mismatch"
        # loose vs the exact f32 module semantics (bf16 MXU rounding only)
        assert jnp.allclose(o, r, atol=5e-5, rtol=5e-2), "f32 reference mismatch"


if __name__ == "__main__":
    key = jax.random.PRNGKey(0)
    k_param, k_in1, k_in2 = jax.random.split(key, 3)
    params = init_params(k_param)

    # Main case: B=512, batch_tile=256 -> 2 grid steps ("parallel" grid, so
    # both TensorCores are used on v7x).
    B = 512
    inputs = _make_inputs(k_in1, B)
    outs = end2end_v5_forward(params, *inputs, batch_tile=256)
    jax.block_until_ready(outs)
    assert outs[0].shape == (B, 1) and outs[1].shape == (B, 1) and outs[2].shape == (B, 1)
    _check(outs, params, inputs)

    # Padding path: batch not divisible by the tile (B=50 -> tile 56, 1 step).
    B2 = 50
    inputs2 = _make_inputs(k_in2, B2)
    outs2 = end2end_v5_forward(params, *inputs2, batch_tile=256)
    jax.block_until_ready(outs2)
    assert outs2[0].shape == (B2, 1)
    _check(outs2, params, inputs2)

    print("KERNEL_OK")
</pallas_src>

<mosaic_0001>
module attributes {stable_mosaic.version = 11 : i64} {
  func.func @end2end_v5_kernel(%arg0: i32, %arg1: memref<256x23xbf16, #tpu.memory_space<vmem>>, %arg2: memref<23x100xbf16, #tpu.memory_space<vmem>>, %arg3: memref<23x120xbf16, #tpu.memory_space<vmem>>, %arg4: memref<23x100xbf16, #tpu.memory_space<vmem>>, %arg5: memref<100x30xbf16, #tpu.memory_space<vmem>>, %arg6: memref<120x30xbf16, #tpu.memory_space<vmem>>, %arg7: memref<30x100xbf16, #tpu.memory_space<vmem>>, %arg8: memref<30x100xbf16, #tpu.memory_space<vmem>>, %arg9: memref<100x30xbf16, #tpu.memory_space<vmem>>, %arg10: memref<16x128xf32, #tpu.memory_space<vmem>>, %arg11: memref<256x8xf32, #tpu.memory_space<vmem>>) attributes {dimension_semantics = [#tpu.dimension_semantics<parallel>], iteration_bounds = array<i64: 2>, scalar_prefetch = 0 : i64, scratch_operands = 0 : i64, tpu.core_type = #tpu.core_type<tc>, window_params = [{transform_indices = @transform_0, window_bounds = array<i64: 256, 23>}, {pipeline_mode = #tpu.pipeline_mode<synchronous>, transform_indices = @transform_1, window_bounds = array<i64: 23, 100>}, {pipeline_mode = #tpu.pipeline_mode<synchronous>, transform_indices = @transform_2, window_bounds = array<i64: 23, 120>}, {pipeline_mode = #tpu.pipeline_mode<synchronous>, transform_indices = @transform_3, window_bounds = array<i64: 23, 100>}, {pipeline_mode = #tpu.pipeline_mode<synchronous>, transform_indices = @transform_4, window_bounds = array<i64: 100, 30>}, {pipeline_mode = #tpu.pipeline_mode<synchronous>, transform_indices = @transform_5, window_bounds = array<i64: 120, 30>}, {pipeline_mode = #tpu.pipeline_mode<synchronous>, transform_indices = @transform_6, window_bounds = array<i64: 30, 100>}, {pipeline_mode = #tpu.pipeline_mode<synchronous>, transform_indices = @transform_7, window_bounds = array<i64: 30, 100>}, {pipeline_mode = #tpu.pipeline_mode<synchronous>, transform_indices = @transform_8, window_bounds = array<i64: 100, 30>}, {pipeline_mode = #tpu.pipeline_mode<synchronous>, transform_indices = @transform_9, window_bounds = array<i64: 16, 128>}, {transform_indices = @transform_10, window_bounds = array<i64: 256, 8>}]} {
    %c0 = arith.constant 0 : index
    %c0_0 = arith.constant 0 : index
    %0 = vector.load %arg1[%c0, %c0_0] : memref<256x23xbf16, #tpu.memory_space<vmem>>, vector<256x23xbf16>
    %c0_1 = arith.constant 0 : index
    %c0_2 = arith.constant 0 : index
    %1 = vector.load %arg10[%c0_1, %c0_2] : memref<16x128xf32, #tpu.memory_space<vmem>>, vector<1x100xf32>
    %c1 = arith.constant 1 : index
    %c0_3 = arith.constant 0 : index
    %2 = vector.load %arg10[%c1, %c0_3] : memref<16x128xf32, #tpu.memory_space<vmem>>, vector<1x120xf32>
    %c2 = arith.constant 2 : index
    %c0_4 = arith.constant 0 : index
    %3 = vector.load %arg10[%c2, %c0_4] : memref<16x128xf32, #tpu.memory_space<vmem>>, vector<1x100xf32>
    %c3 = arith.constant 3 : index
    %c0_5 = arith.constant 0 : index
    %4 = vector.load %arg10[%c3, %c0_5] : memref<16x128xf32, #tpu.memory_space<vmem>>, vector<1x30xf32>
    %c4 = arith.constant 4 : index
    %c0_6 = arith.constant 0 : index
    %5 = vector.load %arg10[%c4, %c0_6] : memref<16x128xf32, #tpu.memory_space<vmem>>, vector<1x30xf32>
    %c5 = arith.constant 5 : index
    %c0_7 = arith.constant 0 : index
    %6 = vector.load %arg10[%c5, %c0_7] : memref<16x128xf32, #tpu.memory_space<vmem>>, vector<1x30xf32>
    %c6 = arith.constant 6 : index
    %c0_8 = arith.constant 0 : index
    %7 = vector.load %arg10[%c6, %c0_8] : memref<16x128xf32, #tpu.memory_space<vmem>>, vector<1x30xf32>
    %c7 = arith.constant 7 : index
    %c0_9 = arith.constant 0 : index
    %8 = vector.load %arg10[%c7, %c0_9] : memref<16x128xf32, #tpu.memory_space<vmem>>, vector<1x30xf32>
    %c8 = arith.constant 8 : index
    %c0_10 = arith.constant 0 : index
    %9 = vector.load %arg10[%c8, %c0_10] : memref<16x128xf32, #tpu.memory_space<vmem>>, vector<1x30xf32>
    %c9 = arith.constant 9 : index
    %c0_11 = arith.constant 0 : index
    %10 = vector.load %arg10[%c9, %c0_11] : memref<16x128xf32, #tpu.memory_space<vmem>>, vector<1x1xf32>
    %c9_12 = arith.constant 9 : index
    %c1_13 = arith.constant 1 : index
    %11 = vector.load %arg10[%c9_12, %c1_13] : memref<16x128xf32, #tpu.memory_space<vmem>>, vector<1x1xf32>
    %c9_14 = arith.constant 9 : index
    %c2_15 = arith.constant 2 : index
    %12 = vector.load %arg10[%c9_14, %c2_15] : memref<16x128xf32, #tpu.memory_space<vmem>>, vector<1x1xf32>
    %c0_16 = arith.constant 0 : index
    %c0_17 = arith.constant 0 : index
    %13 = vector.load %arg2[%c0_16, %c0_17] : memref<23x100xbf16, #tpu.memory_space<vmem>>, vector<23x100xbf16>
    %cst = arith.constant dense<0.000000e+00> : vector<256x100xf32>
    %14 = tpu.matmul %0, %13, %cst {dimension_numbers = #tpu.dot_dimension_numbers<[1], [0], [0], [1], [0, 0, 1, 1], [], []>} : vector<256x23xbf16>, vector<23x100xbf16>, vector<256x100xf32> -> vector<256x100xf32>
    %15 = vector.broadcast %1 : vector<1x100xf32> to vector<256x100xf32>
    %16 = arith.addf %14, %15 : vector<256x100xf32>
    %cst_18 = arith.constant 0.000000e+00 : f32
    %17 = vector.broadcast %cst_18 : f32 to vector<256x100xf32>
    %18 = arith.maximumf %16, %17 : vector<256x100xf32>
    %19 = arith.truncf %18 : vector<256x100xf32> to vector<256x100xbf16>
    %c0_19 = arith.constant 0 : index
    %c0_20 = arith.constant 0 : index
    %20 = vector.load %arg5[%c0_19, %c0_20] : memref<100x30xbf16, #tpu.memory_space<vmem>>, vector<100x30xbf16>
    %cst_21 = arith.constant dense<0.000000e+00> : vector<256x30xf32>
    %21 = tpu.matmul %19, %20, %cst_21 {dimension_numbers = #tpu.dot_dimension_numbers<[1], [0], [0], [1], [0, 0, 1, 1], [], []>} : vector<256x100xbf16>, vector<100x30xbf16>, vector<256x30xf32> -> vector<256x30xf32>
    %22 = vector.broadcast %4 : vector<1x30xf32> to vector<256x30xf32>
    %23 = arith.addf %21, %22 : vector<256x30xf32>
    %cst_22 = arith.constant 0.000000e+00 : f32
    %24 = vector.broadcast %cst_22 : f32 to vector<256x30xf32>
    %25 = arith.maximumf %23, %24 : vector<256x30xf32>
    %26 = vector.broadcast %7 : vector<1x30xf32> to vector<256x30xf32>
    %27 = arith.mulf %25, %26 : vector<256x30xf32>
    %cst_23 = arith.constant dense<0.000000e+00> : vector<256xf32>
    %28 = vector.multi_reduction <add>, %27, %cst_23 [1] : vector<256x30xf32> to vector<256xf32>
    %29 = vector.shape_cast %28 : vector<256xf32> to vector<256x1xf32>
    %30 = vector.broadcast %11 : vector<1x1xf32> to vector<256x1xf32>
    %31 = arith.addf %29, %30 : vector<256x1xf32>
    %c0_24 = arith.constant 0 : index
    %c0_25 = arith.constant 0 : index
    %32 = vector.load %arg3[%c0_24, %c0_25] : memref<23x120xbf16, #tpu.memory_space<vmem>>, vector<23x120xbf16>
    %cst_26 = arith.constant dense<0.000000e+00> : vector<256x120xf32>
    %33 = tpu.matmul %0, %32, %cst_26 {dimension_numbers = #tpu.dot_dimension_numbers<[1], [0], [0], [1], [0, 0, 1, 1], [], []>} : vector<256x23xbf16>, vector<23x120xbf16>, vector<256x120xf32> -> vector<256x120xf32>
    %34 = vector.broadcast %2 : vector<1x120xf32> to vector<256x120xf32>
    %35 = arith.addf %33, %34 : vector<256x120xf32>
    %cst_27 = arith.constant 0.000000e+00 : f32
    %36 = vector.broadcast %cst_27 : f32 to vector<256x120xf32>
    %37 = arith.maximumf %35, %36 : vector<256x120xf32>
    %38 = arith.truncf %37 : vector<256x120xf32> to vector<256x120xbf16>
    %c0_28 = arith.constant 0 : index
    %c0_29 = arith.constant 0 : index
    %39 = vector.load %arg6[%c0_28, %c0_29] : memref<120x30xbf16, #tpu.memory_space<vmem>>, vector<120x30xbf16>
    %cst_30 = arith.constant dense<0.000000e+00> : vector<256x30xf32>
    %40 = tpu.matmul %38, %39, %cst_30 {dimension_numbers = #tpu.dot_dimension_numbers<[1], [0], [0], [1], [0, 0, 1, 1], [], []>} : vector<256x120xbf16>, vector<120x30xbf16>, vector<256x30xf32> -> vector<256x30xf32>
    %41 = vector.broadcast %5 : vector<1x30xf32> to vector<256x30xf32>
    %42 = arith.addf %40, %41 : vector<256x30xf32>
    %cst_31 = arith.constant 0.000000e+00 : f32
    %43 = vector.broadcast %cst_31 : f32 to vector<256x30xf32>
    %44 = arith.maximumf %42, %43 : vector<256x30xf32>
    %45 = vector.broadcast %8 : vector<1x30xf32> to vector<256x30xf32>
    %46 = arith.mulf %44, %45 : vector<256x30xf32>
    %cst_32 = arith.constant dense<0.000000e+00> : vector<256xf32>
    %47 = vector.multi_reduction <add>, %46, %cst_32 [1] : vector<256x30xf32> to vector<256xf32>
    %48 = vector.shape_cast %47 : vector<256xf32> to vector<256x1xf32>
    %49 = vector.broadcast %12 : vector<1x1xf32> to vector<256x1xf32>
    %50 = arith.addf %48, %49 : vector<256x1xf32>
    %51 = arith.truncf %25 : vector<256x30xf32> to vector<256x30xbf16>
    %c0_33 = arith.constant 0 : index
    %c0_34 = arith.constant 0 : index
    %52 = vector.load %arg7[%c0_33, %c0_34] : memref<30x100xbf16, #tpu.memory_space<vmem>>, vector<30x100xbf16>
    %cst_35 = arith.constant dense<0.000000e+00> : vector<256x100xf32>
    %53 = tpu.matmul %51, %52, %cst_35 {dimension_numbers = #tpu.dot_dimension_numbers<[1], [0], [0], [1], [0, 0, 1, 1], [], []>} : vector<256x30xbf16>, vector<30x100xbf16>, vector<256x100xf32> -> vector<256x100xf32>
    %54 = arith.truncf %44 : vector<256x30xf32> to vector<256x30xbf16>
    %c0_36 = arith.constant 0 : index
    %c0_37 = arith.constant 0 : index
    %55 = vector.load %arg8[%c0_36, %c0_37] : memref<30x100xbf16, #tpu.memory_space<vmem>>, vector<30x100xbf16>
    %cst_38 = arith.constant dense<0.000000e+00> : vector<256x100xf32>
    %56 = tpu.matmul %54, %55, %cst_38 {dimension_numbers = #tpu.dot_dimension_numbers<[1], [0], [0], [1], [0, 0, 1, 1], [], []>} : vector<256x30xbf16>, vector<30x100xbf16>, vector<256x100xf32> -> vector<256x100xf32>
    %57 = arith.addf %53, %56 : vector<256x100xf32>
    %c0_39 = arith.constant 0 : index
    %c0_40 = arith.constant 0 : index
    %58 = vector.load %arg4[%c0_39, %c0_40] : memref<23x100xbf16, #tpu.memory_space<vmem>>, vector<23x100xbf16>
    %cst_41 = arith.constant dense<0.000000e+00> : vector<256x100xf32>
    %59 = tpu.matmul %0, %58, %cst_41 {dimension_numbers = #tpu.dot_dimension_numbers<[1], [0], [0], [1], [0, 0, 1, 1], [], []>} : vector<256x23xbf16>, vector<23x100xbf16>, vector<256x100xf32> -> vector<256x100xf32>
    %60 = arith.addf %57, %59 : vector<256x100xf32>
    %61 = vector.broadcast %3 : vector<1x100xf32> to vector<256x100xf32>
    %62 = arith.addf %60, %61 : vector<256x100xf32>
    %cst_42 = arith.constant 0.000000e+00 : f32
    %63 = vector.broadcast %cst_42 : f32 to vector<256x100xf32>
    %64 = arith.maximumf %62, %63 : vector<256x100xf32>
    %65 = arith.truncf %64 : vector<256x100xf32> to vector<256x100xbf16>
    %c0_43 = arith.constant 0 : index
    %c0_44 = arith.constant 0 : index
    %66 = vector.load %arg9[%c0_43, %c0_44] : memref<100x30xbf16, #tpu.memory_space<vmem>>, vector<100x30xbf16>
    %cst_45 = arith.constant dense<0.000000e+00> : vector<256x30xf32>
    %67 = tpu.matmul %65, %66, %cst_45 {dimension_numbers = #tpu.dot_dimension_numbers<[1], [0], [0], [1], [0, 0, 1, 1], [], []>} : vector<256x100xbf16>, vector<100x30xbf16>, vector<256x30xf32> -> vector<256x30xf32>
    %68 = vector.broadcast %6 : vector<1x30xf32> to vector<256x30xf32>
    %69 = arith.addf %67, %68 : vector<256x30xf32>
    %cst_46 = arith.constant 0.000000e+00 : f32
    %70 = vector.broadcast %cst_46 : f32 to vector<256x30xf32>
    %71 = arith.maximumf %69, %70 : vector<256x30xf32>
    %72 = vector.broadcast %9 : vector<1x30xf32> to vector<256x30xf32>
    %73 = arith.mulf %71, %72 : vector<256x30xf32>
    %cst_47 = arith.constant dense<0.000000e+00> : vector<256xf32>
    %74 = vector.multi_reduction <add>, %73, %cst_47 [1] : vector<256x30xf32> to vector<256xf32>
    %75 = vector.shape_cast %74 : vector<256xf32> to vector<256x1xf32>
    %76 = vector.broadcast %10 : vector<1x1xf32> to vector<256x1xf32>
    %77 = arith.addf %75, %76 : vector<256x1xf32>
    %cst_48 = arith.constant 0.000000e+00 : f32
    %78 = vector.broadcast %cst_48 : f32 to vector<256x5xf32>
    %79 = tpu.concatenate %77, %31, %50, %78 in 1 : vector<256x1xf32>, vector<256x1xf32>, vector<256x1xf32>, vector<256x5xf32> -> vector<256x8xf32>
    %c0_49 = arith.constant 0 : index
    %c0_50 = arith.constant 0 : index
    %80 = vector.load %arg11[%c0_49, %c0_50] : memref<256x8xf32, #tpu.memory_space<vmem>>, vector<256x8xf32>
    tpu.vector_store %arg11[%c0_49, %c0_50], %79 {strides = array<i32>} : memref<256x8xf32, #tpu.memory_space<vmem>>, vector<256x8xf32>,
    return
  }
  func.func @transform_0(%arg0: i32) -> (i32, i32) {
    %c0_i32 = arith.constant 0 : i32
    %c0_i32_0 = arith.constant 0 : i32
    return %arg0, %c0_i32 : i32, i32
  }
  func.func @transform_1(%arg0: i32) -> (i32, i32) {
    %c0_i32 = arith.constant 0 : i32
    %c0_i32_0 = arith.constant 0 : i32
    %c0_i32_1 = arith.constant 0 : i32
    return %c0_i32, %c0_i32_0 : i32, i32
  }
  func.func @transform_2(%arg0: i32) -> (i32, i32) {
    %c0_i32 = arith.constant 0 : i32
    %c0_i32_0 = arith.constant 0 : i32
    %c0_i32_1 = arith.constant 0 : i32
    return %c0_i32, %c0_i32_0 : i32, i32
  }
  func.func @transform_3(%arg0: i32) -> (i32, i32) {
    %c0_i32 = arith.constant 0 : i32
    %c0_i32_0 = arith.constant 0 : i32
    %c0_i32_1 = arith.constant 0 : i32
    return %c0_i32, %c0_i32_0 : i32, i32
  }
  func.func @transform_4(%arg0: i32) -> (i32, i32) {
    %c0_i32 = arith.constant 0 : i32
    %c0_i32_0 = arith.constant 0 : i32
    %c0_i32_1 = arith.constant 0 : i32
    return %c0_i32, %c0_i32_0 : i32, i32
  }
  func.func @transform_5(%arg0: i32) -> (i32, i32) {
    %c0_i32 = arith.constant 0 : i32
    %c0_i32_0 = arith.constant 0 : i32
    %c0_i32_1 = arith.constant 0 : i32
    return %c0_i32, %c0_i32_0 : i32, i32
  }
  func.func @transform_6(%arg0: i32) -> (i32, i32) {
    %c0_i32 = arith.constant 0 : i32
    %c0_i32_0 = arith.constant 0 : i32
    %c0_i32_1 = arith.constant 0 : i32
    return %c0_i32, %c0_i32_0 : i32, i32
  }
  func.func @transform_7(%arg0: i32) -> (i32, i32) {
    %c0_i32 = arith.constant 0 : i32
    %c0_i32_0 = arith.constant 0 : i32
    %c0_i32_1 = arith.constant 0 : i32
    return %c0_i32, %c0_i32_0 : i32, i32
  }
  func.func @transform_8(%arg0: i32) -> (i32, i32) {
    %c0_i32 = arith.constant 0 : i32
    %c0_i32_0 = arith.constant 0 : i32
    %c0_i32_1 = arith.constant 0 : i32
    return %c0_i32, %c0_i32_0 : i32, i32
  }
  func.func @transform_9(%arg0: i32) -> (i32, i32) {
    %c0_i32 = arith.constant 0 : i32
    %c0_i32_0 = arith.constant 0 : i32
    %c0_i32_1 = arith.constant 0 : i32
    return %c0_i32, %c0_i32_0 : i32, i32
  }
  func.func @transform_10(%arg0: i32) -> (i32, i32) {
    %c0_i32 = arith.constant 0 : i32
    %c0_i32_0 = arith.constant 0 : i32
    return %arg0, %c0_i32 : i32, i32
  }
}

</mosaic_0001>

<bundles_post_ra>
// kernel: end2end_v5_forward.1
= control target key start
LH: loop header
LB: loop body
LE: loop exit
PB: predicated region body
PF: predicated region fallthrough
CT: control target
= control target key end

     0   :  { %s4253_s13 = smov 0   ;;  %s5515_s0 = inlined_call_operand.vmem [shape: bf16[512,23], index: 0, kind: input, shape index: {}]   ;;  %s5516_s1 = inlined_call_operand.vmem [shape: bf16[23,100], index: 1, kind: input, shape index: {}]   ;;  %s5517_s2 = inlined_call_operand.vmem [shape: bf16[23,120], index: 2, kind: input, shape index: {}]   ;;  %s5518_s3 = inlined_call_operand.vmem [shape: bf16[23,100], index: 3, kind: input, shape index: {}]   ;;  %s5519_s4 = inlined_call_operand.vmem [shape: bf16[100,30], index: 4, kind: input, shape index: {}]   ;;  %s5520_s5 = inlined_call_operand.vmem [shape: bf16[120,30], index: 5, kind: input, shape index: {}]   ;;  %s5521_s6 = inlined_call_operand.vmem [shape: bf16[30,100], index: 6, kind: input, shape index: {}]   ;;  %s5522_s7 = inlined_call_operand.vmem [shape: bf16[30,100], index: 7, kind: input, shape index: {}]   ;;  %s5523_s8 = inlined_call_operand.vmem [shape: bf16[100,30], index: 8, kind: input, shape index: {}]   ;;  %s5524_s9 = inlined_call_operand.vmem [shape: f32[16,128], index: 9, kind: input, shape index: {}]   ;;  %s5525_s10 = inlined_call_operand.vmem [shape: f32[512,8], index: 10, kind: output, shape index: {}]  }
   0x1 LB: > { %s3370_s14 = sadd.s32 4294967295, %s4195_s13   ;;  %p3374_p0 = scmp.ge.s32.totalorder %s4195_s13, 1  ;;  %s4195_s13 = sphi %s4253_s13, %s20_s13  }
   0x2   : > { %p313_p1 = scmp.lt.s32.totalorder %s4195_s13, 3 }
   0x4   : > { %p314_p2 = pnand %p3374_p0, %p313_p1 }
   0x6   : > { %317 = sbr.rel (%p314_p2) target bundleno = 1312 (0x520), region = 60 }
   0xd   : > { %v4125_v0 = vld [vmem:[%s5516_s1] sm:$0xff]   ;;  %vm551_vm0 = vcmask 1042432   ;;  %v4126_v1 = vld [vmem:[%s5516_s1 + $0x8] ss:$0 sps:$4 sm:$0xff]   ;;  %vm552_vm1 = vcmask 1043456   ;;  %v4197_v2 = vmov 65535  }
   0xe   : > { %3727 = vmatprep.subr.bf16.mxu1 %v4125_v0  ;;  %v553_v3 = vsel %vm551_vm0, 4294967295, %v4197_v2  ;;  %s3375_s19 = sshll.u32 %s3370_s14, 5  ;;  %v4141_v4 = vld [vmem:[%s5517_s2] sm:$0xff]   ;;  %v4144_v7 = vld [vmem:[%s5517_s2 + $0x8] ss:$0 sps:$4 sm:$0xff]   ;;  %vm502_vm2 = vcmask 187392  }
   0xf   : > { %3728 = vmatpush3.bf16.msra.mxu1 %v4125_v0  ;;  %v4271_v5 = vsel %vm552_vm1, %v553_v3, 0  ;;  %p352_p3 = scmp.lt.s32.totalorder %s3375_s19, 63  ;;  %3809 = vmatprep.subr.bf16.mxu0 %v4141_v4  ;;  %v4145_v8 = vld [vmem:[%s5519_s4] sm:$0xff]   ;;  %v4146_v11 = vld [vmem:[%s5519_s4 + $0x8] sm:$0xff]   ;;  %v4147_v14 = vld [vmem:[%s5519_s4 + $0x10] sm:$0xff]   ;;  %vm872_vm3 = vcmask 1041408  }
  0x10   : > { %v556_v6 = vand.u32 %v4126_v1, %v4271_v5  ;;  %3810 = vmatpush3.bf16.msra.mxu0 %v4141_v4  ;;  %v1255_v9 = vand.u32 %v4144_v7, %v4271_v5  ;;  %v4148_v17 = vld [vmem:[%s5519_s4 + $0x18] sm:$0xff]   ;;  %v4149_v20 = vld [vmem:[%s5519_s4 + $0x20] sm:$0xff]   ;;  %v4150_v21 = vld [vmem:[%s5519_s4 + $0x28] sm:$0xff]   ;;  %vm823_vm4 = vcmask 818176   ;;  %vm1530_vm5 = vcmask 982016  }
  0x11   : > { %s5549_s19 = smov (!%p352_p3, %s3375_s19), 63  ;;  %v4151_v31 = vld [vmem:[%s5519_s4 + $0x30] ss:$0 sps:$4 sm:$0x33]   ;;  %v4152_v33 = vld [vmem:[%s5520_s5] sm:$0xff]   ;;  %v4153_v4 = vld [vmem:[%s5520_s5 + $0x8] sm:$0xff]  }
  0x12   : > { %3729 = vmatprep.subr.bf16.mxu1 %v556_v6  ;;  %s3376_s26 = sshll.u32 %s5549_s19, 2  ;;  %3811 = vmatprep.subr.bf16.mxu0 %v1255_v9  ;;  %v874_v32 = vsel %vm872_vm3, %v4151_v31, 0  ;;  %v4363_v34 = vld [vmem:[%s5524_s9] ss:$0 sm:$0xff]  ;;  %v4368_v35 = vld [vmem:[%s5524_s9 + $0x1] ss:$0 sm:$0xff] }
  0x13   : > { %3730 = vmatpush3.bf16.msra.mxu1 %v556_v6  ;;  %s4287_s29 = scalar_lea.vmem %s5515_s0, %s3376_s26  ;;  %vm2038_vm6 = vcmask 1046528   ;;  %vm1105_vm7 = vcmask 244736   ;;  %s3378_s16 = sshll.u32 %s5549_s19, 3  ;;  %vm3182_vm8 = vcmask 7168   ;;  %vm3215_vm9 = vcmask 15360  }
  0x14   : > { %3763 = vmatprep.subr.bf16.mxu1 %v4145_v8  ;;  %v4127_v10 = vld [vmem:[%s4287_s29] sm:$0xff]   ;;  %3812 = vmatpush3.bf16.msra.mxu0 %v1255_v9  ;;  %v4128_v12 = vld [vmem:[%s4287_s29 + $0x8] sm:$0xff]   ;;  %v4129_v13 = vld [vmem:[%s4287_s29 + $0x10] sm:$0xff]   ;;  %vm3248_vm10 = vcmask 23552   ;;  %s5199_s20 = scalar_lea.vmem %s5525_s10, %s3378_s16  ;;  %vm3281_vm11 = vcmask 64512  }
  0x15   : > { %3731 = vmatprep.mubr.msk.bf16.mxu1 %vm502_vm2, %v4127_v10  ;;  %3813 = vmatprep.mubr.msk.bf16.mxu0 %vm502_vm2, %v4127_v10  ;;  %v4130_v15 = vld [vmem:[%s4287_s29 + $0x18] sm:$0xff]   ;;  %v4131_v16 = vld [vmem:[%s4287_s29 + $0x20] sm:$0xff]   ;;  %v4132_v18 = vld [vmem:[%s4287_s29 + $0x28] sm:$0xff]  }
  0x16   : > { %3732 = vmatmul.mubr.msk.bf16.vlgmr.msra.gmra.mrb[0].mxu1 %vm502_vm2, %v4128_v12  ;;  %v4133_v19 = vld [vmem:[%s4287_s29 + $0x30] sm:$0xff]   ;;  %v4134_v22 = vld [vmem:[%s4287_s29 + $0x38] sm:$0xff]   ;;  %v4135_v23 = vld [vmem:[%s4287_s29 + $0x40] sm:$0xff]  }
  0x17   : > { %3814 = vmatmul.mubr.msk.bf16.vlgmr.msra.gmra.mrb[0].mxu0 %vm502_vm2, %v4128_v12  ;;  %3735 = vmatprep.mubr.msk.bf16.mxu1 %vm502_vm2, %v4129_v13  ;;  %v4136_v24 = vld [vmem:[%s4287_s29 + $0x48] sm:$0xff]   ;;  %v4137_v25 = vld [vmem:[%s4287_s29 + $0x50] sm:$0xff]   ;;  %v4138_v26 = vld [vmem:[%s4287_s29 + $0x58] sm:$0xff]  }
  0x18   : > { %3817 = vmatprep.mubr.msk.bf16.mxu0 %vm502_vm2, %v4129_v13  ;;  %3764 = vmatpush3.bf16.msra.mxu1 %v4145_v8  ;;  %v4139_v27 = vld [vmem:[%s4287_s29 + $0x60] sm:$0xff]   ;;  %v4140_v28 = vld [vmem:[%s4287_s29 + $0x68] sm:$0xff]   ;;  %v4142_v29 = vld [vmem:[%s4287_s29 + $0x70] sm:$0xff]  }
  0x19   : > { %3765 = vmatprep.subr.bf16.mxu1 %v4146_v11  ;;  %v4143_v30 = vld [vmem:[%s4287_s29 + $0x78] sm:$0xff]  }
  0x1c   : > { %3766 = vmatpush3.bf16.msra.mxu1 %v4146_v11 }
  0x1d   : > { %3767 = vmatprep.subr.bf16.mxu1 %v4147_v14 }
  0x1e   : > { %3736 = vmatmul.mubr.msk.bf16.gmra.mrb[4].mxu1 %vm502_vm2, %v4130_v15 }
  0x1f   : > { %3818 = vmatmul.mubr.msk.bf16.gmra.mrb[4].mxu0 %vm502_vm2, %v4130_v15  ;;  %3739 = vmatprep.mubr.msk.bf16.mxu1 %vm502_vm2, %v4131_v16 }
  0x20   : > { %3821 = vmatprep.mubr.msk.bf16.mxu0 %vm502_vm2, %v4131_v16  ;;  %3768 = vmatpush3.bf16.msra.mxu1 %v4147_v14 }
  0x21   : > { %3769 = vmatprep.subr.bf16.mxu1 %v4148_v17 }
  0x24   : > { %3770 = vmatpush3.bf16.msra.mxu1 %v4148_v17 }
  0x25   : > { %3771 = vmatprep.subr.bf16.mxu1 %v4149_v20 }
  0x26   : > { %3740 = vmatmul.mubr.msk.bf16.gmra.mrb[8].mxu1 %vm502_vm2, %v4132_v18 }
  0x27   : > { %3822 = vmatmul.mubr.msk.bf16.gmra.mrb[8].mxu0 %vm502_vm2, %v4132_v18  ;;  %3743 = vmatprep.mubr.msk.bf16.mxu1 %vm502_vm2, %v4133_v19 }
  0x28   : > { %3825 = vmatprep.mubr.msk.bf16.mxu0 %vm502_vm2, %v4133_v19  ;;  %3772 = vmatpush3.bf16.msra.mxu1 %v4149_v20 }
  0x29   : > { %3773 = vmatprep.subr.bf16.mxu1 %v4150_v21 }
  0x2c   : > { %3774 = vmatpush3.bf16.msra.mxu1 %v4150_v21 }
  0x2d   : > { %4111 = vmatprep.subr.msk.bf16.mxu1 %vm872_vm3, %v4151_v31 }
  0x2e   : > { %3744 = vmatmul.mubr.msk.bf16.gmra.mrb[12].mxu1 %vm502_vm2, %v4134_v22 }
  0x2f   : > { %3826 = vmatmul.mubr.msk.bf16.gmra.mrb[12].mxu0 %vm502_vm2, %v4134_v22  ;;  %3747 = vmatprep.mubr.msk.bf16.mxu1 %vm502_vm2, %v4135_v23  ;;  %v4154_v22 = vld [vmem:[%s5520_s5 + $0x10] sm:$0xff]  }
  0x30   : > { %3829 = vmatprep.mubr.msk.bf16.mxu0 %vm502_vm2, %v4135_v23  ;;  %3776 = vmatpush3.bf16.msra.mxu1 %v874_v32 }
  0x31   : > { %3845 = vmatprep.subr.bf16.mxu1 %v4152_v33 }
  0x36   : > { %3748 = vmatmul.mubr.msk.bf16.gmra.mrb[16].mxu1 %vm502_vm2, %v4136_v24 }
  0x37   : > { %3830 = vmatmul.mubr.msk.bf16.gmra.mrb[16].mxu0 %vm502_vm2, %v4136_v24  ;;  %3751 = vmatprep.mubr.msk.bf16.mxu1 %vm502_vm2, %v4137_v25 }
  0x38   : > { %3833 = vmatprep.mubr.msk.bf16.mxu0 %vm502_vm2, %v4137_v25 }
  0x3e   : > { %3752 = vmatmul.mubr.msk.bf16.gmra.mrb[20].mxu1 %vm502_vm2, %v4138_v26 }
  0x3f   : > { %3834 = vmatmul.mubr.msk.bf16.gmra.mrb[20].mxu0 %vm502_vm2, %v4138_v26  ;;  %3755 = vmatprep.mubr.msk.bf16.mxu1 %vm502_vm2, %v4139_v27 }
  0x40   : > { %3837 = vmatprep.mubr.msk.bf16.mxu0 %vm502_vm2, %v4139_v27 }
  0x46   : > { %3756 = vmatmul.mubr.msk.bf16.gmra.mrb[24].mxu1 %vm502_vm2, %v4140_v28 }
  0x47   : > { %3838 = vmatmul.mubr.msk.bf16.gmra.mrb[24].mxu0 %vm502_vm2, %v4140_v28  ;;  %3759 = vmatprep.mubr.msk.bf16.mxu1 %vm502_vm2, %v4142_v29 }
  0x48   : > { %3841 = vmatprep.mubr.msk.bf16.mxu0 %vm502_vm2, %v4142_v29 }
  0x4e   : > { %3760 = vmatmul.mubr.msk.bf16.gmra.mrb[28].mxu1 %vm502_vm2, %v4143_v30 }
  0x4f   : > { %3842 = vmatmul.mubr.msk.bf16.gmra.mrb[28].mxu0 %vm502_vm2, %v4143_v30 }
  0xe9   : > { %v3733_v36 = vpop.f32.mrb[0].mxu1 }
  0xea   : > { %v3815_v37 = vpop.f32.mrb[0].mxu0  ;;  %v601_v38 = vadd.f32 %v3733_v36, %v4363_v34  ;;  %v592_v39 = vpop.f32.mrb[1].mxu1 }
  0xeb   : > { %v1300_v40 = vadd.f32 %v3815_v37, %v4368_v35  ;;  %v1291_v41 = vpop.f32.mrb[1].mxu0  ;;  %v593_v42 = vadd.f32 %v4363_v34, %v592_v39  ;;  %v3734_v43 = vpop.f32.mrb[2].mxu1  ;;  %v4155_v37 = vld [vmem:[%s5520_s5 + $0x18] sm:$0xff]  }
  0xec   : > { %v1292_v44 = vadd.f32 %v4368_v35, %v1291_v41  ;;  %v3816_v45 = vpop.f32.mrb[2].mxu0  ;;  %v604_v46 = vadd.f32 %v3734_v43, %v4363_v34  ;;  %v595_v47 = vpop.f32.mrb[3].mxu1  ;;  %v721_v54 = vmax.f32 %v601_v38, 0.0 }
  0xed   : > { %v1420_v48 = vmax.f32 %v1300_v40, 0.0  ;;  %v1303_v49 = vadd.f32 %v3816_v45, %v4368_v35  ;;  %v1294_v50 = vpop.f32.mrb[3].mxu0  ;;  %v596_v51 = vadd.f32 %v4363_v34, %v595_v47  ;;  %v719_v57 = vmax.f32 %v593_v42, 0.0 }
  0xee   : > { %v1418_v52 = vmax.f32 %v1292_v44, 0.0  ;;  %v1295_v53 = vadd.f32 %v4368_v35, %v1294_v50  ;;  %v722_v55 = vmax.f32 %v604_v46, 0.0 }
  0xef   : > { %v1421_v56 = vmax.f32 %v1303_v49, 0.0  ;;  %v720_v58 = vmax.f32 %v596_v51, 0.0 }
  0xf0   : > { %v1419_v59 = vmax.f32 %v1295_v53, 0.0  ;;  %v752_v60 = vpack.c.bf16 %v722_v55, %v721_v54  ;;  %v4156_v54 = vld [vmem:[%s5520_s5 + $0x20] sm:$0xff]  }
  0xf1   : > { %v4378_v61 = vpack.c.bf16 %v1421_v56, %v1420_v48  ;;  %v751_v62 = vpack.c.bf16 %v720_v58, %v719_v57  ;;  %v3737_v63 = vpop.f32.mrb[4].mxu1 }
  0xf2   : > { %v4380_v0 = vpack.c.bf16 %v1419_v59, %v1418_v52  ;;  %v3819_v1 = vpop.f32.mrb[4].mxu0  ;;  %v617_v2 = vadd.f32 %v3737_v63, %v4363_v34  ;;  %v608_v3 = vpop.f32.mrb[5].mxu1 }
  0xf3   : > { %v1316_v6 = vadd.f32 %v3819_v1, %v4368_v35  ;;  %v1307_v7 = vpop.f32.mrb[5].mxu0  ;;  %v609_v8 = vadd.f32 %v4363_v34, %v608_v3  ;;  %v3738_v9 = vpop.f32.mrb[6].mxu1  ;;  %3777 = vmatprep.mubr.msk.bf16.mxu1 %vm823_vm4, %v751_v62 }
  0xf4   : > { %v1308_v10 = vadd.f32 %v4368_v35, %v1307_v7  ;;  %v3820_v11 = vpop.f32.mrb[6].mxu0  ;;  %v620_v12 = vadd.f32 %v3738_v9, %v4363_v34  ;;  %v611_v13 = vpop.f32.mrb[7].mxu1  ;;  %3778 = vmatmul.mubr.msk.bf16.vlgmr.msra.gmra.mrb[32].mxu1 %vm823_vm4, %v752_v60  ;;  %v725_v20 = vmax.f32 %v617_v2, 0.0 }
  0xf5   : > { %v1424_v14 = vmax.f32 %v1316_v6, 0.0  ;;  %v1319_v15 = vadd.f32 %v3820_v11, %v4368_v35  ;;  %v1310_v16 = vpop.f32.mrb[7].mxu0  ;;  %v612_v17 = vadd.f32 %v4363_v34, %v611_v13  ;;  %3846 = vmatpush3.bf16.msra.mxu1 %v4152_v33  ;;  %v723_v24 = vmax.f32 %v609_v8, 0.0  ;;  %v4157_v6 = vld [vmem:[%s5520_s5 + $0x28] sm:$0xff]  }
  0xf6   : > { %v1422_v18 = vmax.f32 %v1308_v10, 0.0  ;;  %v1311_v19 = vadd.f32 %v4368_v35, %v1310_v16  ;;  %v726_v21 = vmax.f32 %v620_v12, 0.0  ;;  %3847 = vmatprep.subr.bf16.mxu1 %v4153_v4 }
  0xf7   : > { %v1425_v23 = vmax.f32 %v1319_v15, 0.0  ;;  %v724_v25 = vmax.f32 %v612_v17, 0.0 }
  0xf8   : > { %v1423_v26 = vmax.f32 %v1311_v19, 0.0  ;;  %v754_v27 = vpack.c.bf16 %v726_v21, %v725_v20 }
  0xf9   : > { %v4398_v28 = vpack.c.bf16 %v1425_v23, %v1424_v14  ;;  %v753_v29 = vpack.c.bf16 %v724_v25, %v723_v24  ;;  %v3741_v30 = vpop.f32.mrb[8].mxu1  ;;  %3848 = vmatpush3.bf16.msra.mxu1 %v4153_v4  ;;  %v4158_v23 = vld [vmem:[%s5520_s5 + $0x30] sm:$0xff]  }
  0xfa   : > { %v4400_v31 = vpack.c.bf16 %v1423_v26, %v1422_v18  ;;  %v3823_v32 = vpop.f32.mrb[8].mxu0  ;;  %v633_v33 = vadd.f32 %v3741_v30, %v4363_v34  ;;  %v624_v36 = vpop.f32.mrb[9].mxu1  ;;  %3849 = vmatprep.subr.bf16.mxu1 %v4154_v22 }
  0xfb   : > { %v1332_v38 = vadd.f32 %v3823_v32, %v4368_v35  ;;  %v1323_v39 = vpop.f32.mrb[9].mxu0  ;;  %v625_v40 = vadd.f32 %v4363_v34, %v624_v36  ;;  %v3742_v41 = vpop.f32.mrb[10].mxu1  ;;  %3781 = vmatprep.mubr.msk.bf16.mxu1 %vm823_vm4, %v753_v29 }
  0xfc   : > { %v1324_v42 = vadd.f32 %v4368_v35, %v1323_v39  ;;  %v3824_v43 = vpop.f32.mrb[10].mxu0  ;;  %v636_v44 = vadd.f32 %v3742_v41, %v4363_v34  ;;  %v627_v45 = vpop.f32.mrb[11].mxu1  ;;  %3782 = vmatmul.mubr.msk.bf16.gmra.mrb[36].mxu1 %vm823_vm4, %v754_v27  ;;  %v729_v52 = vmax.f32 %v633_v33, 0.0 }
  0xfd   : > { %v1428_v46 = vmax.f32 %v1332_v38, 0.0  ;;  %v1335_v47 = vadd.f32 %v3824_v43, %v4368_v35  ;;  %v1326_v48 = vpop.f32.mrb[11].mxu0  ;;  %v628_v49 = vadd.f32 %v4363_v34, %v627_v45  ;;  %3850 = vmatpush3.bf16.msra.mxu1 %v4154_v22  ;;  %v727_v56 = vmax.f32 %v625_v40, 0.0  ;;  %v4159_v40 = vld [vmem:[%s5520_s5 + $0x38] ss:$0 sps:$4 sm:$0xff]  }
  0xfe   : > { %v1426_v50 = vmax.f32 %v1324_v42, 0.0  ;;  %v1327_v51 = vadd.f32 %v4368_v35, %v1326_v48  ;;  %v730_v53 = vmax.f32 %v636_v44, 0.0  ;;  %3851 = vmatprep.subr.bf16.mxu1 %v4155_v37 }
  0xff   : > { %v1429_v55 = vmax.f32 %v1335_v47, 0.0  ;;  %v728_v57 = vmax.f32 %v628_v49, 0.0 }
 0x100   : > { %v1427_v58 = vmax.f32 %v1327_v51, 0.0  ;;  %v756_v59 = vpack.c.bf16 %v730_v53, %v729_v52 }
 0x101   : > { %v4418_v60 = vpack.c.bf16 %v1429_v55, %v1428_v46  ;;  %v755_v62 = vpack.c.bf16 %v728_v57, %v727_v56  ;;  %v3745_v63 = vpop.f32.mrb[12].mxu1  ;;  %3852 = vmatpush3.bf16.msra.mxu1 %v4155_v37  ;;  %v1580_v57 = vsel %vm552_vm1, %v4159_v40, 0 }
 0x102   : > { %v4420_v1 = vpack.c.bf16 %v1427_v58, %v1426_v50  ;;  %v3827_v2 = vpop.f32.mrb[12].mxu0  ;;  %v649_v3 = vadd.f32 %v3745_v63, %v4363_v34  ;;  %v640_v4 = vpop.f32.mrb[13].mxu1  ;;  %3853 = vmatprep.subr.bf16.mxu1 %v4156_v54 }
 0x103   : > { %v1348_v7 = vadd.f32 %v3827_v2, %v4368_v35  ;;  %v1339_v8 = vpop.f32.mrb[13].mxu0  ;;  %v641_v9 = vadd.f32 %v4363_v34, %v640_v4  ;;  %v3746_v10 = vpop.f32.mrb[14].mxu1  ;;  %3785 = vmatprep.mubr.msk.bf16.mxu1 %vm823_vm4, %v755_v62 }
 0x104   : > { %v1340_v11 = vadd.f32 %v4368_v35, %v1339_v8  ;;  %v3828_v12 = vpop.f32.mrb[14].mxu0  ;;  %v652_v13 = vadd.f32 %v3746_v10, %v4363_v34  ;;  %v643_v14 = vpop.f32.mrb[15].mxu1  ;;  %3786 = vmatmul.mubr.msk.bf16.gmra.mrb[40].mxu1 %vm823_vm4, %v756_v59  ;;  %v733_v21 = vmax.f32 %v649_v3, 0.0 }
 0x105   : > { %v1432_v15 = vmax.f32 %v1348_v7, 0.0  ;;  %v1351_v16 = vadd.f32 %v3828_v12, %v4368_v35  ;;  %v1342_v17 = vpop.f32.mrb[15].mxu0  ;;  %v644_v18 = vadd.f32 %v4363_v34, %v643_v14  ;;  %3854 = vmatpush3.bf16.msra.mxu1 %v4156_v54  ;;  %v731_v25 = vmax.f32 %v641_v9, 0.0 }
 0x106   : > { %v1430_v19 = vmax.f32 %v1340_v11, 0.0  ;;  %v1343_v20 = vadd.f32 %v4368_v35, %v1342_v17  ;;  %v734_v22 = vmax.f32 %v652_v13, 0.0  ;;  %3855 = vmatprep.subr.bf16.mxu1 %v4157_v6 }
 0x107   : > { %v1433_v24 = vmax.f32 %v1351_v16, 0.0  ;;  %v732_v26 = vmax.f32 %v644_v18, 0.0 }
 0x108   : > { %v1431_v27 = vmax.f32 %v1343_v20, 0.0  ;;  %v758_v29 = vpack.c.bf16 %v734_v22, %v733_v21 }
 0x109   : > { %v4438_v30 = vpack.c.bf16 %v1433_v24, %v1432_v15  ;;  %v757_v32 = vpack.c.bf16 %v732_v26, %v731_v25  ;;  %v3749_v33 = vpop.f32.mrb[16].mxu1  ;;  %3856 = vmatpush3.bf16.msra.mxu1 %v4157_v6 }
 0x10a   : > { %v4440_v36 = vpack.c.bf16 %v1431_v27, %v1430_v19  ;;  %v3831_v37 = vpop.f32.mrb[16].mxu0  ;;  %v665_v38 = vadd.f32 %v3749_v33, %v4363_v34  ;;  %v656_v39 = vpop.f32.mrb[17].mxu1  ;;  %3857 = vmatprep.subr.bf16.mxu1 %v4158_v23 }
 0x10b   : > { %v1364_v41 = vadd.f32 %v3831_v37, %v4368_v35  ;;  %v1355_v42 = vpop.f32.mrb[17].mxu0  ;;  %v657_v43 = vadd.f32 %v4363_v34, %v656_v39  ;;  %v3750_v44 = vpop.f32.mrb[18].mxu1  ;;  %3789 = vmatprep.mubr.msk.bf16.mxu1 %vm823_vm4, %v757_v32 }
 0x10c   : > { %v1356_v45 = vadd.f32 %v4368_v35, %v1355_v42  ;;  %v3832_v46 = vpop.f32.mrb[18].mxu0  ;;  %v668_v47 = vadd.f32 %v3750_v44, %v4363_v34  ;;  %v659_v48 = vpop.f32.mrb[19].mxu1  ;;  %3790 = vmatmul.mubr.msk.bf16.gmra.mrb[44].mxu1 %vm823_vm4, %v758_v29  ;;  %v737_v55 = vmax.f32 %v665_v38, 0.0 }
 0x10d   : > { %v1436_v49 = vmax.f32 %v1364_v41, 0.0  ;;  %v1367_v50 = vadd.f32 %v3832_v46, %v4368_v35  ;;  %v1358_v51 = vpop.f32.mrb[19].mxu0  ;;  %v660_v52 = vadd.f32 %v4363_v34, %v659_v48  ;;  %3858 = vmatpush3.bf16.msra.mxu1 %v4158_v23  ;;  %v735_v59 = vmax.f32 %v657_v43, 0.0 }
 0x10e   : > { %v1434_v53 = vmax.f32 %v1356_v45, 0.0  ;;  %v1359_v54 = vadd.f32 %v4368_v35, %v1358_v51  ;;  %v738_v56 = vmax.f32 %v668_v47, 0.0  ;;  %4112 = vmatprep.subr.msk.bf16.mxu1 %vm552_vm1, %v4159_v40 }
 0x10f   : > { %v1437_v58 = vmax.f32 %v1367_v50, 0.0  ;;  %v736_v62 = vmax.f32 %v660_v52, 0.0 }
 0x110   : > { %v1435_v63 = vmax.f32 %v1359_v54, 0.0  ;;  %v760_v2 = vpack.c.bf16 %v738_v56, %v737_v55 }
 0x111   : > { %v4457_v3 = vpack.c.bf16 %v1437_v58, %v1436_v49  ;;  %v759_v4 = vpack.c.bf16 %v736_v62, %v735_v59  ;;  %v3753_v6 = vpop.f32.mrb[20].mxu1  ;;  %3860 = vmatpush3.bf16.msra.mxu1 %v1580_v57 }
 0x112   : > { %v4459_v7 = vpack.c.bf16 %v1435_v63, %v1434_v53  ;;  %v3835_v8 = vpop.f32.mrb[20].mxu0  ;;  %v681_v9 = vadd.f32 %v3753_v6, %v4363_v34  ;;  %v672_v10 = vpop.f32.mrb[21].mxu1 }
 0x113   : > { %v1380_v11 = vadd.f32 %v3835_v8, %v4368_v35  ;;  %v1371_v12 = vpop.f32.mrb[21].mxu0  ;;  %v673_v13 = vadd.f32 %v4363_v34, %v672_v10  ;;  %v3754_v14 = vpop.f32.mrb[22].mxu1  ;;  %3793 = vmatprep.mubr.msk.bf16.mxu1 %vm823_vm4, %v759_v4 }
 0x114   : > { %v1372_v15 = vadd.f32 %v4368_v35, %v1371_v12  ;;  %v3836_v16 = vpop.f32.mrb[22].mxu0  ;;  %v684_v17 = vadd.f32 %v3754_v14, %v4363_v34  ;;  %v675_v18 = vpop.f32.mrb[23].mxu1  ;;  %3794 = vmatmul.mubr.msk.bf16.gmra.mrb[48].mxu1 %vm823_vm4, %v760_v2  ;;  %v741_v25 = vmax.f32 %v681_v9, 0.0 }
 0x115   : > { %v1440_v19 = vmax.f32 %v1380_v11, 0.0  ;;  %v1383_v20 = vadd.f32 %v3836_v16, %v4368_v35  ;;  %v1374_v21 = vpop.f32.mrb[23].mxu0  ;;  %v676_v22 = vadd.f32 %v4363_v34, %v675_v18  ;;  %v739_v29 = vmax.f32 %v673_v13, 0.0 }
 0x116   : > { %v1438_v23 = vmax.f32 %v1372_v15, 0.0  ;;  %v1375_v24 = vadd.f32 %v4368_v35, %v1374_v21  ;;  %v742_v26 = vmax.f32 %v684_v17, 0.0 }
 0x117   : > { %v1441_v27 = vmax.f32 %v1383_v20, 0.0  ;;  %v740_v32 = vmax.f32 %v676_v22, 0.0 }
 0x118   : > { %v1439_v33 = vmax.f32 %v1375_v24, 0.0  ;;  %v762_v37 = vpack.c.bf16 %v742_v26, %v741_v25 }
 0x119   : > { %v4471_v38 = vpack.c.bf16 %v1441_v27, %v1440_v19  ;;  %v761_v39 = vpack.c.bf16 %v740_v32, %v739_v29  ;;  %v3757_v40 = vpop.f32.mrb[24].mxu1 }
 0x11a   : > { %v4473_v41 = vpack.c.bf16 %v1439_v33, %v1438_v23  ;;  %v3839_v42 = vpop.f32.mrb[24].mxu0  ;;  %v697_v43 = vadd.f32 %v3757_v40, %v4363_v34  ;;  %v688_v44 = vpop.f32.mrb[25].mxu1 }
 0x11b   : > { %v1396_v45 = vadd.f32 %v3839_v42, %v4368_v35  ;;  %v1387_v46 = vpop.f32.mrb[25].mxu0  ;;  %v689_v47 = vadd.f32 %v4363_v34, %v688_v44  ;;  %v3758_v48 = vpop.f32.mrb[26].mxu1  ;;  %3797 = vmatprep.mubr.msk.bf16.mxu1 %vm823_vm4, %v761_v39 }
 0x11c   : > { %v1388_v49 = vadd.f32 %v4368_v35, %v1387_v46  ;;  %v3840_v50 = vpop.f32.mrb[26].mxu0  ;;  %v700_v51 = vadd.f32 %v3758_v48, %v4363_v34  ;;  %v691_v52 = vpop.f32.mrb[27].mxu1  ;;  %3798 = vmatmul.mubr.msk.bf16.gmra.mrb[52].mxu1 %vm823_vm4, %v762_v37  ;;  %v745_v59 = vmax.f32 %v697_v43, 0.0 }
 0x11d   : > { %v1444_v53 = vmax.f32 %v1396_v45, 0.0  ;;  %v1399_v54 = vadd.f32 %v3840_v50, %v4368_v35  ;;  %v1390_v55 = vpop.f32.mrb[27].mxu0  ;;  %v692_v56 = vadd.f32 %v4363_v34, %v691_v52  ;;  %v743_v2 = vmax.f32 %v689_v47, 0.0 }
 0x11e   : > { %v1442_v57 = vmax.f32 %v1388_v49, 0.0  ;;  %v1391_v58 = vadd.f32 %v4368_v35, %v1390_v55  ;;  %v746_v62 = vmax.f32 %v700_v51, 0.0 }
 0x11f   : > { %v1445_v63 = vmax.f32 %v1399_v54, 0.0  ;;  %v744_v4 = vmax.f32 %v692_v56, 0.0 }
 0x120   : > { %v1443_v6 = vmax.f32 %v1391_v58, 0.0  ;;  %v764_v8 = vpack.c.bf16 %v746_v62, %v745_v59 }
 0x121   : > { %v1463_v9 = vpack.c.bf16 %v1445_v63, %v1444_v53  ;;  %v763_v10 = vpack.c.bf16 %v744_v4, %v743_v2  ;;  %v3761_v11 = vpop.f32.mrb[28].mxu1 }
 0x122   : > { %v1462_v12 = vpack.c.bf16 %v1443_v6, %v1442_v57  ;;  %v3843_v13 = vpop.f32.mrb[28].mxu0  ;;  %v713_v14 = vadd.f32 %v3761_v11, %v4363_v34  ;;  %v704_v15 = vpop.f32.mrb[29].mxu1 }
 0x123   : > { %v1412_v16 = vadd.f32 %v3843_v13, %v4368_v35  ;;  %v1403_v17 = vpop.f32.mrb[29].mxu0  ;;  %v705_v18 = vadd.f32 %v4363_v34, %v704_v15  ;;  %v3762_v19 = vpop.f32.mrb[30].mxu1  ;;  %3801 = vmatprep.mubr.msk.bf16.mxu1 %vm823_vm4, %v763_v10 }
 0x124   : > { %v1404_v20 = vadd.f32 %v4368_v35, %v1403_v17  ;;  %v3844_v21 = vpop.f32.mrb[30].mxu0  ;;  %v716_v22 = vadd.f32 %v3762_v19, %v4363_v34  ;;  %v707_v23 = vpop.f32.mrb[31].mxu1  ;;  %3802 = vmatmul.mubr.msk.bf16.gmra.mrb[56].mxu1 %vm823_vm4, %v764_v8  ;;  %v749_v33 = vmax.f32 %v713_v14, 0.0 }
 0x125   : > { %v1448_v24 = vmax.f32 %v1412_v16, 0.0  ;;  %v1415_v25 = vadd.f32 %v3844_v21, %v4368_v35  ;;  %v1406_v26 = vpop.f32.mrb[31].mxu0  ;;  %v708_v27 = vadd.f32 %v4363_v34, %v707_v23  ;;  %v747_v40 = vmax.f32 %v705_v18, 0.0  ;;  %v4160_v34 = vld [vmem:[%s5522_s7] sm:$0xff]  }
 0x126   : > { %v1446_v29 = vmax.f32 %v1404_v20, 0.0  ;;  %v1407_v32 = vadd.f32 %v4368_v35, %v1406_v26  ;;  %v750_v37 = vmax.f32 %v716_v22, 0.0  ;;  %3893 = vmatprep.subr.bf16.mxu0 %v4160_v34  ;;  %v4161_v35 = vld [vmem:[%s5522_s7 + $0x8] sm:$0x7f]  }
 0x127   : > { %v1449_v39 = vmax.f32 %v1415_v25, 0.0  ;;  %v748_v42 = vmax.f32 %v708_v27, 0.0  ;;  %3894 = vmatpush3.bf16.msra.mxu0 %v4160_v34 }
 0x128   : > { %v1447_v43 = vmax.f32 %v1407_v32, 0.0  ;;  %v766_v44 = vpack.c.bf16 %v750_v37, %v749_v33  ;;  %4113 = vmatprep.subr.msk.bf16.mxu0 %vm2038_vm6, %v4161_v35 }
 0x129   : > { %v1465_v45 = vpack.c.bf16 %v1449_v39, %v1448_v24  ;;  %v765_v46 = vpack.c.bf16 %v748_v42, %v747_v40 }
 0x12a   : > { %v1464_v47 = vpack.c.bf16 %v1447_v43, %v1446_v29 }
 0x12b   : > { %3805 = vmatprep.mubr.msk.bf16.mxu1 %vm823_vm4, %v765_v46 }
 0x12c   : > { %3806 = vmatmul.mubr.msk.bf16.gmra.mrb[60].mxu1 %vm823_vm4, %v766_v44 }
 0x12d   : > { %3861 = vmatprep.mubr.msk.bf16.mxu1 %vm1530_vm5, %v4380_v0  ;;  %v4536_v0 = vld [vmem:[%s5521_s6] sm:$0xff]  }
 0x134   : > { %3862 = vmatmul.mubr.msk.bf16.vlgmr.msra.gmra.mrb[64].mxu1 %vm1530_vm5, %v4378_v61  ;;  %v2040_v61 = vsel %vm2038_vm6, %v4161_v35, 0 }
 0x135   : > { %3865 = vmatprep.mubr.msk.bf16.mxu1 %vm1530_vm5, %v4400_v31  ;;  %3896 = vmatpush3.bf16.msra.mxu0 %v2040_v61 }
 0x136   : > { %3929 = vmatprep.subr.bf16.mxu0 %v4536_v0 }
 0x13c   : > { %3866 = vmatmul.mubr.msk.bf16.gmra.mrb[68].mxu1 %vm1530_vm5, %v4398_v28  ;;  %v4542_v28 = vld [vmem:[%s5524_s9 + $0x3] ss:$0 sm:$0xff] }
 0x13d   : > { %3869 = vmatprep.mubr.msk.bf16.mxu1 %vm1530_vm5, %v4420_v1 }
 0x144   : > { %3870 = vmatmul.mubr.msk.bf16.gmra.mrb[72].mxu1 %vm1530_vm5, %v4418_v60 }
 0x145   : > { %3873 = vmatprep.mubr.msk.bf16.mxu1 %vm1530_vm5, %v4440_v36 }
 0x14c   : > { %3874 = vmatmul.mubr.msk.bf16.gmra.mrb[76].mxu1 %vm1530_vm5, %v4438_v30 }
 0x14d   : > { %3877 = vmatprep.mubr.msk.bf16.mxu1 %vm1530_vm5, %v4459_v7 }
 0x154   : > { %3878 = vmatmul.mubr.msk.bf16.gmra.mrb[80].mxu1 %vm1530_vm5, %v4457_v3  ;;  %v4549_v3 = vld [vmem:[%s5524_s9 + $0x6] ss:$0 sm:$0xff] }
 0x155   : > { %3881 = vmatprep.mubr.msk.bf16.mxu1 %vm1530_vm5, %v4473_v41 }
 0x15c   : > { %3882 = vmatmul.mubr.msk.bf16.gmra.mrb[84].mxu1 %vm1530_vm5, %v4471_v38 }
 0x15d   : > { %3885 = vmatprep.mubr.msk.bf16.mxu1 %vm1530_vm5, %v1462_v12 }
 0x164   : > { %3886 = vmatmul.mubr.msk.bf16.gmra.mrb[88].mxu1 %vm1530_vm5, %v1463_v9 }
 0x165   : > { %3889 = vmatprep.mubr.msk.bf16.mxu1 %vm1530_vm5, %v1464_v47 }
 0x16c   : > { %3890 = vmatmul.mubr.msk.bf16.gmra.mrb[92].mxu1 %vm1530_vm5, %v1465_v45 }
 0x1c7   : > { %v3779_v31 = vpop.f32.mrb[32].mxu1 }
 0x1c8   : > { %v919_v60 = vadd.f32 %v3779_v31, %v4542_v28  ;;  %v910_v1 = vpop.f32.mrb[33].mxu1 }
 0x1c9   : > { %v911_v30 = vadd.f32 %v4542_v28, %v910_v1  ;;  %v3780_v36 = vpop.f32.mrb[34].mxu1 }
 0x1ca   : > { %v1039_v7 = vmax.f32 %v919_v60, 0.0  ;;  %v922_v38 = vadd.f32 %v3780_v36, %v4542_v28  ;;  %v913_v41 = vpop.f32.mrb[35].mxu1 }
 0x1cb   : > { %v1037_v48 = vmax.f32 %v911_v30, 0.0  ;;  %v914_v49 = vadd.f32 %v4542_v28, %v913_v41 }
 0x1cc   : > { %v1040_v50 = vmax.f32 %v922_v38, 0.0  ;;  %v1075_v51 = vmul.f32 %v4549_v3, %v1039_v7 }
 0x1cd   : > { %v1038_v52 = vmax.f32 %v914_v49, 0.0  ;;  %v1073_v53 = vmul.f32 %v4549_v3, %v1037_v48 }
 0x1ce   : > { %v4555_v54 = vpack.c.bf16 %v1040_v50, %v1039_v7  ;;  %v1112_v55 = vsel %vm1105_vm7, %v1075_v51, 0.0  ;;  %v1076_v56 = vmul.f32 %v4549_v3, %v1040_v50 }
 0x1cf   : > { %v4559_v57 = vpack.c.bf16 %v1038_v52, %v1037_v48  ;;  %1113 = vadd.xlane.f32.xlu1 %v1112_v55  ;;  %v3783_v58 = vpop.f32.mrb[36].mxu1  ;;  %v1106_v59 = vsel %vm1105_vm7, %v1073_v53, 0.0  ;;  %v1074_v62 = vmul.f32 %v4549_v3, %v1038_v52 }
 0x1d0   : > { %v935_v63 = vadd.f32 %v3783_v58, %v4542_v28  ;;  %v926_v2 = vpop.f32.mrb[37].mxu1  ;;  %1107 = vadd.xlane.f32.xlu0 %v1106_v59  ;;  %v1115_v11 = vsel %vm1105_vm7, %v1076_v56, 0.0 }
 0x1d1   : > { %v927_v4 = vadd.f32 %v4542_v28, %v926_v2  ;;  %v3784_v6 = vpop.f32.mrb[38].mxu1  ;;  %v1109_v14 = vsel %vm1105_vm7, %v1074_v62, 0.0 }
 0x1d2   : > { %v1043_v8 = vmax.f32 %v935_v63, 0.0  ;;  %v938_v9 = vadd.f32 %v3784_v6, %v4542_v28  ;;  %v929_v10 = vpop.f32.mrb[39].mxu1 }
 0x1d3   : > { %v1041_v12 = vmax.f32 %v927_v4, 0.0  ;;  %v930_v13 = vadd.f32 %v4542_v28, %v929_v10  ;;  %1116 = vadd.xlane.f32.xlu1 %v1115_v11 }
 0x1d4   : > { %v1044_v15 = vmax.f32 %v938_v9, 0.0  ;;  %1110 = vadd.xlane.f32.xlu0 %v1109_v14  ;;  %v1079_v16 = vmul.f32 %v4549_v3, %v1043_v8 }
 0x1d5   : > { %v1042_v17 = vmax.f32 %v930_v13, 0.0  ;;  %v1077_v23 = vmul.f32 %v4549_v3, %v1041_v12 }
 0x1d6   : > { %v4570_v18 = vpack.c.bf16 %v1044_v15, %v1043_v8  ;;  %v1124_v19 = vsel %vm1105_vm7, %v1079_v16, 0.0  ;;  %v1080_v20 = vmul.f32 %v4549_v3, %v1044_v15 }
 0x1d7   : > { %v4574_v21 = vpack.c.bf16 %v1042_v17, %v1041_v12  ;;  %v3787_v22 = vpop.f32.mrb[40].mxu1  ;;  %v1078_v27 = vmul.f32 %v4549_v3, %v1042_v17  ;;  %v1118_v43 = vsel %vm1105_vm7, %v1077_v23, 0.0 }
 0x1d8   : > { %v951_v24 = vadd.f32 %v3787_v22, %v4542_v28  ;;  %v942_v25 = vpop.f32.mrb[41].mxu1  ;;  %1125 = vadd.xlane.f32.xlu0 %v1124_v19  ;;  %v1127_v26 = vsel %vm1105_vm7, %v1080_v20, 0.0 }
 0x1d9   : > { %v943_v29 = vadd.f32 %v4542_v28, %v942_v25  ;;  %1128 = vadd.xlane.f32.xlu1 %v1127_v26  ;;  %v3788_v32 = vpop.f32.mrb[42].mxu1  ;;  %v1121_v45 = vsel %vm1105_vm7, %v1078_v27, 0.0 }
 0x1da   : > { %v1047_v33 = vmax.f32 %v951_v24, 0.0  ;;  %v954_v37 = vadd.f32 %v3788_v32, %v4542_v28  ;;  %v945_v39 = vpop.f32.mrb[43].mxu1 }
 0x1db   : > { %v1045_v40 = vmax.f32 %v943_v29, 0.0  ;;  %v946_v42 = vadd.f32 %v4542_v28, %v945_v39 }
 0x1dc   : > { %v1048_v44 = vmax.f32 %v954_v37, 0.0  ;;  %1119 = vadd.xlane.f32.xlu0 %v1118_v43  ;;  %v1083_v46 = vmul.f32 %v4549_v3, %v1047_v33 }
 0x1dd   : > { %v1046_v47 = vmax.f32 %v946_v42, 0.0  ;;  %1122 = vadd.xlane.f32.xlu1 %v1121_v45  ;;  %v1081_v1 = vmul.f32 %v4549_v3, %v1045_v40 }
 0x1de   : > { %v4586_v34 = vpack.c.bf16 %v1048_v44, %v1047_v33  ;;  %v1136_v35 = vsel %vm1105_vm7, %v1083_v46, 0.0  ;;  %v1084_v61 = vmul.f32 %v4549_v3, %v1048_v44 }
 0x1df   : > { %v4590_v31 = vpack.c.bf16 %v1046_v47, %v1045_v40  ;;  %v3791_v60 = vpop.f32.mrb[44].mxu1  ;;  %v1082_v38 = vmul.f32 %v4549_v3, %v1046_v47  ;;  %v1130_v55 = vsel %vm1105_vm7, %v1081_v1, 0.0 }
 0x1e0   : > { %v967_v30 = vadd.f32 %v3791_v60, %v4542_v28  ;;  %v958_v36 = vpop.f32.mrb[45].mxu1  ;;  %1137 = vadd.xlane.f32.xlu0 %v1136_v35  ;;  %v1139_v7 = vsel %vm1105_vm7, %v1084_v61, 0.0 }
 0x1e1   : > { %v959_v41 = vadd.f32 %v4542_v28, %v958_v36  ;;  %v3792_v48 = vpop.f32.mrb[46].mxu1  ;;  %1140 = vadd.xlane.f32.xlu1 %v1139_v7  ;;  %v1133_v58 = vsel %vm1105_vm7, %v1082_v38, 0.0 }
 0x1e2   : > { %v1051_v49 = vmax.f32 %v967_v30, 0.0  ;;  %v970_v50 = vadd.f32 %v3792_v48, %v4542_v28  ;;  %v961_v51 = vpop.f32.mrb[47].mxu1 }
 0x1e3   : > { %v1049_v52 = vmax.f32 %v959_v41, 0.0  ;;  %v962_v53 = vadd.f32 %v4542_v28, %v961_v51 }
 0x1e4   : > { %v1052_v56 = vmax.f32 %v970_v50, 0.0  ;;  %1131 = vadd.xlane.f32.xlu0 %v1130_v55  ;;  %v1087_v59 = vmul.f32 %v4549_v3, %v1051_v49 }
 0x1e5   : > { %v1050_v62 = vmax.f32 %v962_v53, 0.0  ;;  %1134 = vadd.xlane.f32.xlu1 %v1133_v58  ;;  %v1085_v9 = vmul.f32 %v4549_v3, %v1049_v52 }
 0x1e6   : > { %v4602_v63 = vpack.c.bf16 %v1052_v56, %v1051_v49  ;;  %v1148_v2 = vsel %vm1105_vm7, %v1087_v59, 0.0  ;;  %v1088_v4 = vmul.f32 %v4549_v3, %v1052_v56 }
 0x1e7   : > { %v4606_v6 = vpack.c.bf16 %v1050_v62, %v1049_v52  ;;  %v3795_v8 = vpop.f32.mrb[48].mxu1  ;;  %v1086_v13 = vmul.f32 %v4549_v3, %v1050_v62  ;;  %v1142_v23 = vsel %vm1105_vm7, %v1085_v9, 0.0 }
 0x1e8   : > { %v983_v10 = vadd.f32 %v3795_v8, %v4542_v28  ;;  %v974_v11 = vpop.f32.mrb[49].mxu1  ;;  %1149 = vadd.xlane.f32.xlu0 %v1148_v2  ;;  %v1151_v12 = vsel %vm1105_vm7, %v1088_v4, 0.0 }
 0x1e9   : > { %v975_v14 = vadd.f32 %v4542_v28, %v974_v11  ;;  %v3796_v15 = vpop.f32.mrb[50].mxu1  ;;  %1152 = vadd.xlane.f32.xlu1 %v1151_v12  ;;  %v1145_v25 = vsel %vm1105_vm7, %v1086_v13, 0.0 }
 0x1ea   : > { %v1055_v16 = vmax.f32 %v983_v10, 0.0  ;;  %v986_v17 = vadd.f32 %v3796_v15, %v4542_v28  ;;  %v977_v19 = vpop.f32.mrb[51].mxu1 }
 0x1eb   : > { %v1053_v20 = vmax.f32 %v975_v14, 0.0  ;;  %v978_v22 = vadd.f32 %v4542_v28, %v977_v19 }
 0x1ec   : > { %v1056_v24 = vmax.f32 %v986_v17, 0.0  ;;  %1143 = vadd.xlane.f32.xlu0 %v1142_v23  ;;  %v1091_v26 = vmul.f32 %v4549_v3, %v1055_v16 }
 0x1ed   : > { %v1054_v27 = vmax.f32 %v978_v22, 0.0  ;;  %1146 = vadd.xlane.f32.xlu1 %v1145_v25  ;;  %v1089_v40 = vmul.f32 %v4549_v3, %v1053_v20 }
 0x1ee   : > { %v4618_v29 = vpack.c.bf16 %v1056_v24, %v1055_v16  ;;  %v1160_v32 = vsel %vm1105_vm7, %v1091_v26, 0.0  ;;  %v1092_v33 = vmul.f32 %v4549_v3, %v1056_v24 }
 0x1ef   : > { %v4622_v37 = vpack.c.bf16 %v1054_v27, %v1053_v20  ;;  %v3799_v39 = vpop.f32.mrb[52].mxu1  ;;  %v1090_v45 = vmul.f32 %v4549_v3, %v1054_v27  ;;  %v1154_v36 = vsel %vm1105_vm7, %v1089_v40, 0.0 }
 0x1f0   : > { %v999_v42 = vadd.f32 %v3799_v39, %v4542_v28  ;;  %v990_v43 = vpop.f32.mrb[53].mxu1  ;;  %1161 = vadd.xlane.f32.xlu0 %v1160_v32  ;;  %v1163_v44 = vsel %vm1105_vm7, %v1092_v33, 0.0 }
 0x1f1   : > { %v991_v46 = vadd.f32 %v4542_v28, %v990_v43  ;;  %v3800_v47 = vpop.f32.mrb[54].mxu1  ;;  %1164 = vadd.xlane.f32.xlu1 %v1163_v44  ;;  %v1157_v38 = vsel %vm1105_vm7, %v1090_v45, 0.0 }
 0x1f2   : > { %v1059_v35 = vmax.f32 %v999_v42, 0.0  ;;  %v1002_v61 = vadd.f32 %v3800_v47, %v4542_v28  ;;  %v993_v60 = vpop.f32.mrb[55].mxu1 }
 0x1f3   : > { %v1057_v1 = vmax.f32 %v991_v46, 0.0  ;;  %v994_v30 = vadd.f32 %v4542_v28, %v993_v60 }
 0x1f4   : > { %v1060_v7 = vmax.f32 %v1002_v61, 0.0  ;;  %1155 = vadd.xlane.f32.xlu0 %v1154_v36  ;;  %v1095_v41 = vmul.f32 %v4549_v3, %v1059_v35 }
 0x1f5   : > { %v1058_v48 = vmax.f32 %v994_v30, 0.0  ;;  %1158 = vadd.xlane.f32.xlu1 %v1157_v38  ;;  %v1093_v55 = vmul.f32 %v4549_v3, %v1057_v1  ;;  %v4669_v30 = vld [vmem:[%s5524_s9 + $0x4] ss:$0 sm:$0xff] }
 0x1f6   : > { %v4634_v49 = vpack.c.bf16 %v1060_v7, %v1059_v35  ;;  %v1172_v50 = vsel %vm1105_vm7, %v1095_v41, 0.0  ;;  %v1096_v51 = vmul.f32 %v4549_v3, %v1060_v7 }
 0x1f7   : > { %v4638_v52 = vpack.c.bf16 %v1058_v48, %v1057_v1  ;;  %v3803_v53 = vpop.f32.mrb[56].mxu1  ;;  %v1094_v62 = vmul.f32 %v4549_v3, %v1058_v48  ;;  %v1166_v13 = vsel %vm1105_vm7, %v1093_v55, 0.0 }
 0x1f8   : > { %v1015_v56 = vadd.f32 %v3803_v53, %v4542_v28  ;;  %v1006_v58 = vpop.f32.mrb[57].mxu1  ;;  %1173 = vadd.xlane.f32.xlu0 %v1172_v50  ;;  %v1175_v59 = vsel %vm1105_vm7, %v1096_v51, 0.0 }
 0x1f9   : > { %v1007_v2 = vadd.f32 %v4542_v28, %v1006_v58  ;;  %v3804_v4 = vpop.f32.mrb[58].mxu1  ;;  %1176 = vadd.xlane.f32.xlu1 %v1175_v59  ;;  %v1169_v15 = vsel %vm1105_vm7, %v1094_v62, 0.0  ;;  %v4685_v59 = vld [vmem:[%s5524_s9 + $0x7] ss:$0 sm:$0xff] }
 0x1fa   : > { %v1063_v8 = vmax.f32 %v1015_v56, 0.0  ;;  %v1018_v9 = vadd.f32 %v3804_v4, %v4542_v28  ;;  %v1009_v10 = vpop.f32.mrb[59].mxu1 }
 0x1fb   : > { %v1061_v11 = vmax.f32 %v1007_v2, 0.0  ;;  %v1010_v12 = vadd.f32 %v4542_v28, %v1009_v10 }
 0x1fc   : > { %v1064_v14 = vmax.f32 %v1018_v9, 0.0  ;;  %1167 = vadd.xlane.f32.xlu0 %v1166_v13  ;;  %v1099_v16 = vmul.f32 %v4549_v3, %v1063_v8 }
 0x1fd   : > { %v1062_v17 = vmax.f32 %v1010_v12, 0.0  ;;  %1170 = vadd.xlane.f32.xlu1 %v1169_v15  ;;  %v1097_v25 = vmul.f32 %v4549_v3, %v1061_v11 }
 0x1fe   : > { %v4650_v19 = vpack.c.bf16 %v1064_v14, %v1063_v8  ;;  %v1184_v20 = vsel %vm1105_vm7, %v1099_v16, 0.0  ;;  %v1100_v22 = vmul.f32 %v4549_v3, %v1064_v14 }
 0x1ff   : > { %v4654_v23 = vpack.c.bf16 %v1062_v17, %v1061_v11  ;;  %v3807_v24 = vpop.f32.mrb[60].mxu1  ;;  %v1098_v33 = vmul.f32 %v4549_v3, %v1062_v17  ;;  %v1178_v47 = vsel %vm1105_vm7, %v1097_v25, 0.0 }
 0x200   : > { %v1031_v26 = vadd.f32 %v3807_v24, %v4542_v28  ;;  %v1022_v27 = vpop.f32.mrb[61].mxu1  ;;  %1185 = vadd.xlane.f32.xlu0 %v1184_v20  ;;  %v1187_v32 = vsel %vm1105_vm7, %v1100_v22, 0.0 }
 0x201   : > { %v1023_v39 = vadd.f32 %v4542_v28, %v1022_v27  ;;  %v3808_v40 = vpop.f32.mrb[62].mxu1  ;;  %1188 = vadd.xlane.f32.xlu1 %v1187_v32  ;;  %v1181_v61 = vsel %vm1105_vm7, %v1098_v33, 0.0  ;;  %v4163_v32 = vld [vmem:[%s5521_s6 + $0x8] sm:$0x7f]  }
 0x202   : > { %v1067_v42 = vmax.f32 %v1031_v26, 0.0  ;;  %v1034_v43 = vadd.f32 %v3808_v40, %v4542_v28  ;;  %v1025_v44 = vpop.f32.mrb[63].mxu1 }
 0x203   : > { %v1065_v45 = vmax.f32 %v1023_v39, 0.0  ;;  %v1026_v46 = vadd.f32 %v4542_v28, %v1025_v44 }
 0x204   : > { %v1068_v35 = vmax.f32 %v1034_v43, 0.0  ;;  %1179 = vadd.xlane.f32.xlu0 %v1178_v47  ;;  %v1103_v60 = vmul.f32 %v4549_v3, %v1067_v42 }
 0x205   : > { %v1066_v1 = vmax.f32 %v1026_v46, 0.0  ;;  %1182 = vadd.xlane.f32.xlu1 %v1181_v61  ;;  %v1101_v48 = vmul.f32 %v4549_v3, %v1065_v45 }
 0x206   : > { %v4671_v36 = vpack.c.bf16 %v1068_v35, %v1067_v42  ;;  %v1196_v7 = vsel %vm1105_vm7, %v1103_v60, 0.0  ;;  %v1104_v28 = vmul.f32 %v4549_v3, %v1068_v35  ;;  %v2263_v60 = vsel %vm2038_vm6, %v4163_v32, 0 }
 0x207   : > { %v4675_v38 = vpack.c.bf16 %v1066_v1, %v1065_v45  ;;  %v3863_v41 = vpop.f32.mrb[64].mxu1  ;;  %v1102_v55 = vmul.f32 %v4549_v3, %v1066_v1  ;;  %v1190_v10 = vsel %vm1105_vm7, %v1101_v48, 0.0  ;;  %v4715_v1 = vld [vmem:[%s5518_s3] sm:$0xff]  }
 0x208   : > { %v1625_v50 = vadd.f32 %v3863_v41, %v4669_v30  ;;  %v1616_v51 = vpop.f32.mrb[65].mxu1  ;;  %1197 = vadd.xlane.f32.xlu0 %v1196_v7  ;;  %v1199_v53 = vsel %vm1105_vm7, %v1104_v28, 0.0 }
 0x209   : > { %v1617_v56 = vadd.f32 %v4669_v30, %v1616_v51  ;;  %v3864_v58 = vpop.f32.mrb[66].mxu1  ;;  %1200 = vadd.xlane.f32.xlu1 %v1199_v53  ;;  %v1193_v3 = vsel %vm1105_vm7, %v1102_v55, 0.0 }
 0x20a   : > { %v1745_v62 = vmax.f32 %v1625_v50, 0.0  ;;  %v1628_v2 = vadd.f32 %v3864_v58, %v4669_v30  ;;  %v1619_v4 = vpop.f32.mrb[67].mxu1 }
 0x20b   : > { %v1743_v8 = vmax.f32 %v1617_v56, 0.0  ;;  %v1620_v9 = vadd.f32 %v4669_v30, %v1619_v4 }
 0x20c   : > { %v1746_v11 = vmax.f32 %v1628_v2, 0.0  ;;  %1191 = vadd.xlane.f32.xlu0 %v1190_v10  ;;  %v1781_v12 = vmul.f32 %v4685_v59, %v1745_v62 }
 0x20d   : > { %v1744_v13 = vmax.f32 %v1620_v9, 0.0  ;;  %1194 = vadd.xlane.f32.xlu1 %v1193_v3  ;;  %v1779_v22 = vmul.f32 %v4685_v59, %v1743_v8 }
 0x20e   : > { %v1960_v14 = vpack.c.bf16 %v1746_v11, %v1745_v62  ;;  %v1817_v15 = vsel %vm1105_vm7, %v1781_v12, 0.0  ;;  %v1782_v16 = vmul.f32 %v4685_v59, %v1746_v11 }
 0x20f   : > { %v1959_v17 = vpack.c.bf16 %v1744_v13, %v1743_v8  ;;  %v3867_v20 = vpop.f32.mrb[68].mxu1  ;;  %v1780_v27 = vmul.f32 %v4685_v59, %v1744_v13  ;;  %v1811_v46 = vsel %vm1105_vm7, %v1779_v22, 0.0 }
 0x210   : > { %v1641_v24 = vadd.f32 %v3867_v20, %v4669_v30  ;;  %v1632_v25 = vpop.f32.mrb[69].mxu1  ;;  %1818 = vadd.xlane.f32.xlu0 %v1817_v15  ;;  %v1820_v26 = vsel %vm1105_vm7, %v1782_v16, 0.0 }
 0x211   : > { %v1633_v33 = vadd.f32 %v4669_v30, %v1632_v25  ;;  %v3868_v39 = vpop.f32.mrb[70].mxu1  ;;  %3897 = vmatprep.mubr.msk.bf16.mxu0 %vm1105_vm7, %v1959_v17  ;;  %1821 = vadd.xlane.f32.xlu1 %v1820_v26  ;;  %v1814_v35 = vsel %vm1105_vm7, %v1780_v27, 0.0 }
 0x212   : > { %v1749_v40 = vmax.f32 %v1641_v24, 0.0  ;;  %v1644_v42 = vadd.f32 %v3868_v39, %v4669_v30  ;;  %v1635_v43 = vpop.f32.mrb[71].mxu1  ;;  %3898 = vmatmul.mubr.msk.bf16.vlgmr.msra.gmra.mrb[32].mxu0 %vm1105_vm7, %v1960_v14 }
 0x213   : > { %v1747_v44 = vmax.f32 %v1633_v33, 0.0  ;;  %v1636_v45 = vadd.f32 %v4669_v30, %v1635_v43  ;;  %3930 = vmatpush3.bf16.msra.mxu0 %v4536_v0 }
 0x214   : > { %v1750_v47 = vmax.f32 %v1644_v42, 0.0  ;;  %1812 = vadd.xlane.f32.xlu0 %v1811_v46  ;;  %v1785_v61 = vmul.f32 %v4685_v59, %v1749_v40  ;;  %4114 = vmatprep.subr.msk.bf16.mxu0 %vm2038_vm6, %v4163_v32 }
 0x215   : > { %v1748_v7 = vmax.f32 %v1636_v45, 0.0  ;;  %1815 = vadd.xlane.f32.xlu1 %v1814_v35  ;;  %v1783_v51 = vmul.f32 %v4685_v59, %v1747_v44 }
 0x216   : > { %v1962_v0 = vpack.c.bf16 %v1750_v47, %v1749_v40  ;;  %v1829_v28 = vsel %vm1105_vm7, %v1785_v61, 0.0  ;;  %v1786_v41 = vmul.f32 %v4685_v59, %v1750_v47 }
 0x217   : > { %v1961_v48 = vpack.c.bf16 %v1748_v7, %v1747_v44  ;;  %v3871_v50 = vpop.f32.mrb[72].mxu1  ;;  %3932 = vmatpush3.bf16.msra.mxu0 %v2263_v60  ;;  %v1784_v58 = vmul.f32 %v4685_v59, %v1748_v7  ;;  %v1823_v3 = vsel %vm1105_vm7, %v1783_v51, 0.0 }
 0x218   : > { %v1657_v53 = vadd.f32 %v3871_v50, %v4669_v30  ;;  %v1648_v55 = vpop.f32.mrb[73].mxu1  ;;  %1830 = vadd.xlane.f32.xlu0 %v1829_v28  ;;  %v1832_v56 = vsel %vm1105_vm7, %v1786_v41, 0.0  ;;  %3965 = vmatprep.subr.bf16.mxu0 %v4715_v1 }
 0x219   : > { %v1649_v62 = vadd.f32 %v4669_v30, %v1648_v55  ;;  %v3872_v2 = vpop.f32.mrb[74].mxu1  ;;  %3901 = vmatprep.mubr.msk.bf16.mxu0 %vm1105_vm7, %v1961_v48  ;;  %1833 = vadd.xlane.f32.xlu1 %v1832_v56  ;;  %v1826_v13 = vsel %vm1105_vm7, %v1784_v58, 0.0 }
 0x21a   : > { %v1753_v4 = vmax.f32 %v1657_v53, 0.0  ;;  %v1660_v8 = vadd.f32 %v3872_v2, %v4669_v30  ;;  %v1651_v9 = vpop.f32.mrb[75].mxu1  ;;  %3902 = vmatmul.mubr.msk.bf16.gmra.mrb[36].mxu0 %vm1105_vm7, %v1962_v0 }
 0x21b   : > { %v1751_v10 = vmax.f32 %v1649_v62, 0.0  ;;  %v1652_v11 = vadd.f32 %v4669_v30, %v1651_v9 }
 0x21c   : > { %v1754_v12 = vmax.f32 %v1660_v8, 0.0  ;;  %1824 = vadd.xlane.f32.xlu0 %v1823_v3  ;;  %v1789_v14 = vmul.f32 %v4685_v59, %v1753_v4 }
 0x21d   : > { %v1752_v15 = vmax.f32 %v1652_v11, 0.0  ;;  %1827 = vadd.xlane.f32.xlu1 %v1826_v13  ;;  %v1787_v25 = vmul.f32 %v4685_v59, %v1751_v10 }
 0x21e   : > { %v1964_v16 = vpack.c.bf16 %v1754_v12, %v1753_v4  ;;  %v1841_v17 = vsel %vm1105_vm7, %v1789_v14, 0.0  ;;  %v1790_v20 = vmul.f32 %v4685_v59, %v1754_v12 }
 0x21f   : > { %v1963_v22 = vpack.c.bf16 %v1752_v15, %v1751_v10  ;;  %v3875_v24 = vpop.f32.mrb[76].mxu1  ;;  %v1788_v33 = vmul.f32 %v4685_v59, %v1752_v15  ;;  %v1835_v47 = vsel %vm1105_vm7, %v1787_v25, 0.0 }
 0x220   : > { %v1673_v26 = vadd.f32 %v3875_v24, %v4669_v30  ;;  %v1664_v27 = vpop.f32.mrb[77].mxu1  ;;  %1842 = vadd.xlane.f32.xlu0 %v1841_v17  ;;  %v1844_v32 = vsel %vm1105_vm7, %v1790_v20, 0.0 }
 0x221   : > { %v1665_v39 = vadd.f32 %v4669_v30, %v1664_v27  ;;  %v3876_v40 = vpop.f32.mrb[78].mxu1  ;;  %3905 = vmatprep.mubr.msk.bf16.mxu0 %vm1105_vm7, %v1963_v22  ;;  %1845 = vadd.xlane.f32.xlu1 %v1844_v32  ;;  %v1838_v61 = vsel %vm1105_vm7, %v1788_v33, 0.0 }
 0x222   : > { %v1757_v42 = vmax.f32 %v1673_v26, 0.0  ;;  %v1676_v43 = vadd.f32 %v3876_v40, %v4669_v30  ;;  %v1667_v44 = vpop.f32.mrb[79].mxu1  ;;  %3906 = vmatmul.mubr.msk.bf16.gmra.mrb[40].mxu0 %vm1105_vm7, %v1964_v16 }
 0x223   : > { %v1755_v45 = vmax.f32 %v1665_v39, 0.0  ;;  %v1668_v46 = vadd.f32 %v4669_v30, %v1667_v44 }
 0x224   : > { %v1758_v35 = vmax.f32 %v1676_v43, 0.0  ;;  %1836 = vadd.xlane.f32.xlu0 %v1835_v47  ;;  %v1793_v60 = vmul.f32 %v4685_v59, %v1757_v42 }
 0x225   : > { %v1756_v7 = vmax.f32 %v1668_v46, 0.0  ;;  %1839 = vadd.xlane.f32.xlu1 %v1838_v61  ;;  %v1791_v51 = vmul.f32 %v4685_v59, %v1755_v45 }
 0x226   : > { %v1966_v0 = vpack.c.bf16 %v1758_v35, %v1757_v42  ;;  %v1853_v28 = vsel %vm1105_vm7, %v1793_v60, 0.0  ;;  %v1794_v41 = vmul.f32 %v4685_v59, %v1758_v35 }
 0x227   : > { %v1965_v48 = vpack.c.bf16 %v1756_v7, %v1755_v45  ;;  %v3879_v50 = vpop.f32.mrb[80].mxu1  ;;  %v1792_v58 = vmul.f32 %v4685_v59, %v1756_v7  ;;  %v1847_v3 = vsel %vm1105_vm7, %v1791_v51, 0.0 }
 0x228   : > { %v1689_v53 = vadd.f32 %v3879_v50, %v4669_v30  ;;  %v1680_v55 = vpop.f32.mrb[81].mxu1  ;;  %1854 = vadd.xlane.f32.xlu0 %v1853_v28  ;;  %v1856_v56 = vsel %vm1105_vm7, %v1794_v41, 0.0 }
 0x229   : > { %v1681_v62 = vadd.f32 %v4669_v30, %v1680_v55  ;;  %v3880_v2 = vpop.f32.mrb[82].mxu1  ;;  %3909 = vmatprep.mubr.msk.bf16.mxu0 %vm1105_vm7, %v1965_v48  ;;  %1857 = vadd.xlane.f32.xlu1 %v1856_v56  ;;  %v1850_v13 = vsel %vm1105_vm7, %v1792_v58, 0.0 }
 0x22a   : > { %v1761_v4 = vmax.f32 %v1689_v53, 0.0  ;;  %v1692_v8 = vadd.f32 %v3880_v2, %v4669_v30  ;;  %v1683_v9 = vpop.f32.mrb[83].mxu1  ;;  %3910 = vmatmul.mubr.msk.bf16.gmra.mrb[44].mxu0 %vm1105_vm7, %v1966_v0 }
 0x22b   : > { %v1759_v10 = vmax.f32 %v1681_v62, 0.0  ;;  %v1684_v11 = vadd.f32 %v4669_v30, %v1683_v9 }
 0x22c   : > { %v1762_v12 = vmax.f32 %v1692_v8, 0.0  ;;  %1848 = vadd.xlane.f32.xlu0 %v1847_v3  ;;  %v1797_v14 = vmul.f32 %v4685_v59, %v1761_v4 }
 0x22d   : > { %v1760_v15 = vmax.f32 %v1684_v11, 0.0  ;;  %1851 = vadd.xlane.f32.xlu1 %v1850_v13  ;;  %v1795_v25 = vmul.f32 %v4685_v59, %v1759_v10 }
 0x22e   : > { %v1968_v16 = vpack.c.bf16 %v1762_v12, %v1761_v4  ;;  %v1865_v17 = vsel %vm1105_vm7, %v1797_v14, 0.0  ;;  %v1798_v20 = vmul.f32 %v4685_v59, %v1762_v12 }
 0x22f   : > { %v1967_v22 = vpack.c.bf16 %v1760_v15, %v1759_v10  ;;  %v3883_v24 = vpop.f32.mrb[84].mxu1  ;;  %v1796_v33 = vmul.f32 %v4685_v59, %v1760_v15  ;;  %v1859_v47 = vsel %vm1105_vm7, %v1795_v25, 0.0 }
 0x230   : > { %v1705_v26 = vadd.f32 %v3883_v24, %v4669_v30  ;;  %v1696_v27 = vpop.f32.mrb[85].mxu1  ;;  %1866 = vadd.xlane.f32.xlu0 %v1865_v17  ;;  %v1868_v32 = vsel %vm1105_vm7, %v1798_v20, 0.0 }
 0x231   : > { %v1697_v39 = vadd.f32 %v4669_v30, %v1696_v27  ;;  %v3884_v40 = vpop.f32.mrb[86].mxu1  ;;  %3913 = vmatprep.mubr.msk.bf16.mxu0 %vm1105_vm7, %v1967_v22  ;;  %1869 = vadd.xlane.f32.xlu1 %v1868_v32  ;;  %v1862_v61 = vsel %vm1105_vm7, %v1796_v33, 0.0 }
 0x232   : > { %v1765_v42 = vmax.f32 %v1705_v26, 0.0  ;;  %v1708_v43 = vadd.f32 %v3884_v40, %v4669_v30  ;;  %v1699_v44 = vpop.f32.mrb[87].mxu1  ;;  %3914 = vmatmul.mubr.msk.bf16.gmra.mrb[48].mxu0 %vm1105_vm7, %v1968_v16 }
 0x233   : > { %v1763_v45 = vmax.f32 %v1697_v39, 0.0  ;;  %v1700_v46 = vadd.f32 %v4669_v30, %v1699_v44 }
 0x234   : > { %v1766_v35 = vmax.f32 %v1708_v43, 0.0  ;;  %1860 = vadd.xlane.f32.xlu0 %v1859_v47  ;;  %v1801_v60 = vmul.f32 %v4685_v59, %v1765_v42 }
 0x235   : > { %v1764_v7 = vmax.f32 %v1700_v46, 0.0  ;;  %1863 = vadd.xlane.f32.xlu1 %v1862_v61  ;;  %v1799_v51 = vmul.f32 %v4685_v59, %v1763_v45 }
 0x236   : > { %v1970_v0 = vpack.c.bf16 %v1766_v35, %v1765_v42  ;;  %v1877_v28 = vsel %vm1105_vm7, %v1801_v60, 0.0  ;;  %v1802_v41 = vmul.f32 %v4685_v59, %v1766_v35 }
 0x237   : > { %v1969_v48 = vpack.c.bf16 %v1764_v7, %v1763_v45  ;;  %v3887_v50 = vpop.f32.mrb[88].mxu1  ;;  %v1800_v58 = vmul.f32 %v4685_v59, %v1764_v7  ;;  %v1871_v3 = vsel %vm1105_vm7, %v1799_v51, 0.0 }
 0x238   : > { %v1721_v53 = vadd.f32 %v3887_v50, %v4669_v30  ;;  %v1712_v55 = vpop.f32.mrb[89].mxu1  ;;  %1878 = vadd.xlane.f32.xlu0 %v1877_v28  ;;  %v1880_v56 = vsel %vm1105_vm7, %v1802_v41, 0.0 }
 0x239   : > { %v1713_v62 = vadd.f32 %v4669_v30, %v1712_v55  ;;  %v3888_v2 = vpop.f32.mrb[90].mxu1  ;;  %3917 = vmatprep.mubr.msk.bf16.mxu0 %vm1105_vm7, %v1969_v48  ;;  %1881 = vadd.xlane.f32.xlu1 %v1880_v56  ;;  %v1874_v13 = vsel %vm1105_vm7, %v1800_v58, 0.0  ;;  %v4186_v56 = vld [vmem:[%s4287_s29 + $0x68] sm:$0xff]   ;;  %v4187_v58 = vld [vmem:[%s4287_s29 + $0x70] sm:$0xff]  }
 0x23a   : > { %v1769_v4 = vmax.f32 %v1721_v53, 0.0  ;;  %v1724_v8 = vadd.f32 %v3888_v2, %v4669_v30  ;;  %v1715_v9 = vpop.f32.mrb[91].mxu1  ;;  %3918 = vmatmul.mubr.msk.bf16.gmra.mrb[52].mxu0 %vm1105_vm7, %v1970_v0  ;;  %v4165_v53 = vld [vmem:[%s5518_s3 + $0x8] ss:$0 sps:$4 sm:$0xff]  }
 0x23b   : > { %v1767_v10 = vmax.f32 %v1713_v62, 0.0  ;;  %v1716_v11 = vadd.f32 %v4669_v30, %v1715_v9  ;;  %v2439_v55 = vand.u32 %v4165_v53, %v4271_v5  ;;  %v4168_v5 = vld [vmem:[%s5523_s8 + $0x10] sm:$0xff]   ;;  %v4188_v62 = vld [vmem:[%s4287_s29 + $0x78] sm:$0xff]  }
 0x23c   : > { %v1770_v12 = vmax.f32 %v1724_v8, 0.0  ;;  %1872 = vadd.xlane.f32.xlu0 %v1871_v3  ;;  %v1805_v14 = vmul.f32 %v4685_v59, %v1769_v4  ;;  %v4172_v2 = vld [vmem:[%s5523_s8 + $0x30] ss:$0 sps:$4 sm:$0x33]   ;;  %v4908_v8 = vld [vmem:[%s5524_s9 + $0x2] ss:$0 sm:$0xff] }
 0x23d   : > { %v1768_v15 = vmax.f32 %v1716_v11, 0.0  ;;  %1875 = vadd.xlane.f32.xlu1 %v1874_v13  ;;  %v1803_v25 = vmul.f32 %v4685_v59, %v1767_v10 }
 0x23e   : > { %v1972_v16 = vpack.c.bf16 %v1770_v12, %v1769_v4  ;;  %v1889_v17 = vsel %vm1105_vm7, %v1805_v14, 0.0  ;;  %v1806_v20 = vmul.f32 %v4685_v59, %v1770_v12  ;;  %v2823_v4 = vsel %vm872_vm3, %v4172_v2, 0 }
 0x23f   : > { %v1971_v22 = vpack.c.bf16 %v1768_v15, %v1767_v10  ;;  %v3891_v24 = vpop.f32.mrb[92].mxu1  ;;  %v1804_v33 = vmul.f32 %v4685_v59, %v1768_v15  ;;  %v1883_v47 = vsel %vm1105_vm7, %v1803_v25, 0.0 }
 0x240   : > { %v1737_v26 = vadd.f32 %v3891_v24, %v4669_v30  ;;  %v1728_v27 = vpop.f32.mrb[93].mxu1  ;;  %1890 = vadd.xlane.f32.xlu0 %v1889_v17  ;;  %v1892_v32 = vsel %vm1105_vm7, %v1806_v20, 0.0 }
 0x241   : > { %v1729_v39 = vadd.f32 %v4669_v30, %v1728_v27  ;;  %v3892_v40 = vpop.f32.mrb[94].mxu1  ;;  %3921 = vmatprep.mubr.msk.bf16.mxu0 %vm1105_vm7, %v1971_v22  ;;  %1893 = vadd.xlane.f32.xlu1 %v1892_v32  ;;  %v1886_v61 = vsel %vm1105_vm7, %v1804_v33, 0.0 }
 0x242   : > { %v1773_v42 = vmax.f32 %v1737_v26, 0.0  ;;  %v1740_v43 = vadd.f32 %v3892_v40, %v4669_v30  ;;  %v1731_v44 = vpop.f32.mrb[95].mxu1  ;;  %3922 = vmatmul.mubr.msk.bf16.gmra.mrb[56].mxu0 %vm1105_vm7, %v1972_v16 }
 0x243   : > { %v1771_v45 = vmax.f32 %v1729_v39, 0.0  ;;  %v1732_v46 = vadd.f32 %v4669_v30, %v1731_v44 }
 0x244   : > { %v1774_v35 = vmax.f32 %v1740_v43, 0.0  ;;  %1884 = vadd.xlane.f32.xlu0 %v1883_v47  ;;  %v4802_v60 = vmul.f32 %v4685_v59, %v1773_v42 }
 0x245   : > { %v1772_v7 = vmax.f32 %v1732_v46, 0.0  ;;  %1887 = vadd.xlane.f32.xlu1 %v1886_v61  ;;  %v1807_v0 = vmul.f32 %v4685_v59, %v1771_v45 }
 0x246   : > { %v1974_v28 = vpack.c.bf16 %v1774_v35, %v1773_v42  ;;  %v4806_v41 = vmul.f32 %v4685_v59, %v1774_v35 }
 0x247   : > { %v1973_v48 = vpack.c.bf16 %v1772_v7, %v1771_v45  ;;  %v1895_v30 = vsel %vm1105_vm7, %v1807_v0, 0.0  ;;  %v1808_v50 = vmul.f32 %v4685_v59, %v1772_v7  ;;  %v4167_v59 = vld [vmem:[%s5523_s8 + $0x8] sm:$0xff]  }
 0x248   : > { %1896 = vadd.xlane.f32.xlu0 %v1895_v30 }
 0x249   : > { %3925 = vmatprep.mubr.msk.bf16.mxu0 %vm1105_vm7, %v1973_v48  ;;  %v1898_v51 = vsel %vm1105_vm7, %v1808_v50, 0.0 }
 0x24a   : > { %3926 = vmatmul.mubr.msk.bf16.gmra.mrb[60].mxu0 %vm1105_vm7, %v1974_v28  ;;  %1899 = vadd.xlane.f32.xlu1 %v1898_v51 }
 0x24b   : > { %3933 = vmatprep.mubr.msk.bf16.mxu0 %vm1105_vm7, %v4559_v57  ;;  %v4166_v57 = vld [vmem:[%s5523_s8] sm:$0xff]  }
 0x24c   : > { %4001 = vmatprep.subr.bf16.mxu1 %v4166_v57 }
 0x24d   : > { %4002 = vmatpush3.bf16.msra.mxu1 %v4166_v57 }
 0x24e   : > { %4003 = vmatprep.subr.bf16.mxu1 %v4167_v59 }
 0x251   : > { %4004 = vmatpush3.bf16.msra.mxu1 %v4167_v59 }
 0x252   : > { %3934 = vmatmul.mubr.msk.bf16.vlgmr.msra.gmra.mrb[32].mxu0 %vm1105_vm7, %v4555_v54  ;;  %4005 = vmatprep.subr.bf16.mxu1 %v4168_v5  ;;  %v4169_v54 = vld [vmem:[%s5523_s8 + $0x18] sm:$0xff]  }
 0x253   : > { %3966 = vmatpush3.bf16.msra.mxu0 %v4715_v1  ;;  %3937 = vmatprep.mubr.msk.bf16.mxu0 %vm1105_vm7, %v4574_v21  ;;  %v4171_v21 = vld [vmem:[%s5523_s8 + $0x28] sm:$0xff]   ;;  %v4185_v1 = vld [vmem:[%s4287_s29 + $0x60] sm:$0xff]  }
 0x254   : > { %3967 = vmatprep.subr.bf16.mxu0 %v2439_v55 }
 0x255   : > { %4006 = vmatpush3.bf16.msra.mxu1 %v4168_v5 }
 0x256   : > { %4007 = vmatprep.subr.bf16.mxu1 %v4169_v54 }
 0x257   : > { %3968 = vmatpush3.bf16.msra.mxu0 %v2439_v55 }
 0x259   : > { %4008 = vmatpush3.bf16.msra.mxu1 %v4169_v54 }
 0x25a   : > { %3938 = vmatmul.mubr.msk.bf16.gmra.mrb[36].mxu0 %vm1105_vm7, %v4570_v18  ;;  %v4170_v18 = vld [vmem:[%s5523_s8 + $0x20] sm:$0xff]  }
 0x25b   : > { %3941 = vmatprep.mubr.msk.bf16.mxu0 %vm1105_vm7, %v4590_v31  ;;  %4009 = vmatprep.subr.bf16.mxu1 %v4170_v18  ;;  %v4174_v31 = vld [vmem:[%s4287_s29 + $0x8] sm:$0xff]  }
 0x25d   : > { %4010 = vmatpush3.bf16.msra.mxu1 %v4170_v18 }
 0x25e   : > { %4011 = vmatprep.subr.bf16.mxu1 %v4171_v21 }
 0x261   : > { %4012 = vmatpush3.bf16.msra.mxu1 %v4171_v21 }
 0x262   : > { %3942 = vmatmul.mubr.msk.bf16.gmra.mrb[40].mxu0 %vm1105_vm7, %v4586_v34  ;;  %v4173_v34 = vld [vmem:[%s4287_s29] sm:$0xff]   ;;  %4115 = vmatprep.subr.msk.bf16.mxu1 %vm872_vm3, %v4172_v2 }
 0x263   : > { %3945 = vmatprep.mubr.msk.bf16.mxu0 %vm1105_vm7, %v4606_v6  ;;  %v4176_v6 = vld [vmem:[%s4287_s29 + $0x18] sm:$0xff]  }
 0x265   : > { %4014 = vmatpush3.bf16.msra.mxu1 %v2823_v4 }
 0x26a   : > { %3946 = vmatmul.mubr.msk.bf16.gmra.mrb[44].mxu0 %vm1105_vm7, %v4602_v63  ;;  %v4175_v63 = vld [vmem:[%s4287_s29 + $0x10] sm:$0xff]  }
 0x26b   : > { %3949 = vmatprep.mubr.msk.bf16.mxu0 %vm1105_vm7, %v4622_v37  ;;  %v4178_v37 = vld [vmem:[%s4287_s29 + $0x28] sm:$0xff]  }
 0x272   : > { %3950 = vmatmul.mubr.msk.bf16.gmra.mrb[48].mxu0 %vm1105_vm7, %v4618_v29  ;;  %v4177_v29 = vld [vmem:[%s4287_s29 + $0x20] sm:$0xff]  }
 0x273   : > { %3953 = vmatprep.mubr.msk.bf16.mxu0 %vm1105_vm7, %v4638_v52  ;;  %v4180_v52 = vld [vmem:[%s4287_s29 + $0x38] sm:$0xff]  }
 0x27a   : > { %3954 = vmatmul.mubr.msk.bf16.gmra.mrb[52].mxu0 %vm1105_vm7, %v4634_v49  ;;  %v4179_v49 = vld [vmem:[%s4287_s29 + $0x30] sm:$0xff]  }
 0x27b   : > { %3957 = vmatprep.mubr.msk.bf16.mxu0 %vm1105_vm7, %v4654_v23  ;;  %v4182_v23 = vld [vmem:[%s4287_s29 + $0x48] sm:$0xff]  }
 0x282   : > { %3958 = vmatmul.mubr.msk.bf16.gmra.mrb[56].mxu0 %vm1105_vm7, %v4650_v19  ;;  %v4181_v19 = vld [vmem:[%s4287_s29 + $0x40] sm:$0xff]  }
 0x283   : > { %3961 = vmatprep.mubr.msk.bf16.mxu0 %vm1105_vm7, %v4675_v38  ;;  %v4184_v38 = vld [vmem:[%s4287_s29 + $0x58] sm:$0xff]  }
 0x28a   : > { %3962 = vmatmul.mubr.msk.bf16.gmra.mrb[60].mxu0 %vm1105_vm7, %v4671_v36  ;;  %v4183_v36 = vld [vmem:[%s4287_s29 + $0x50] sm:$0xff]  }
 0x28b   : > { %3969 = vmatprep.mubr.msk.bf16.mxu0 %vm502_vm2, %v4173_v34 }
 0x292   : > { %3970 = vmatmul.mubr.msk.bf16.vlgmr.msra.gmra.mrb[32].mxu0 %vm502_vm2, %v4174_v31 }
 0x293   : > { %3973 = vmatprep.mubr.msk.bf16.mxu0 %vm502_vm2, %v4175_v63 }
 0x29a   : > { %3974 = vmatmul.mubr.msk.bf16.gmra.mrb[36].mxu0 %vm502_vm2, %v4176_v6 }
 0x29b   : > { %3977 = vmatprep.mubr.msk.bf16.mxu0 %vm502_vm2, %v4177_v29 }
 0x2a2   : > { %3978 = vmatmul.mubr.msk.bf16.gmra.mrb[40].mxu0 %vm502_vm2, %v4178_v37 }
 0x2a3   : > { %3981 = vmatprep.mubr.msk.bf16.mxu0 %vm502_vm2, %v4179_v49 }
 0x2aa   : > { %3982 = vmatmul.mubr.msk.bf16.gmra.mrb[44].mxu0 %vm502_vm2, %v4180_v52 }
 0x2ab   : > { %3985 = vmatprep.mubr.msk.bf16.mxu0 %vm502_vm2, %v4181_v19 }
 0x2b2   : > { %3986 = vmatmul.mubr.msk.bf16.gmra.mrb[48].mxu0 %vm502_vm2, %v4182_v23 }
 0x2b3   : > { %3989 = vmatprep.mubr.msk.bf16.mxu0 %vm502_vm2, %v4183_v36 }
 0x2ba   : > { %3990 = vmatmul.mubr.msk.bf16.gmra.mrb[52].mxu0 %vm502_vm2, %v4184_v38 }
 0x2bb   : > { %3993 = vmatprep.mubr.msk.bf16.mxu0 %vm502_vm2, %v4185_v1 }
 0x2c2   : > { %3994 = vmatmul.mubr.msk.bf16.gmra.mrb[56].mxu0 %vm502_vm2, %v4186_v56 }
 0x2c3   : > { %3997 = vmatprep.mubr.msk.bf16.mxu0 %vm502_vm2, %v4187_v58 }
 0x2ca   : > { %3998 = vmatmul.mubr.msk.bf16.gmra.mrb[60].mxu0 %vm502_vm2, %v4188_v62 }
 0x365   : > { %v3971_v9 = vpop.f32.mrb[32].mxu0 }
 0x366   : > { %v2640_v10 = vadd.f32 %v3971_v9, %v4908_v8  ;;  %v2475_v11 = vpop.f32.mrb[33].mxu0 }
 0x367   : > { %v2638_v3 = vadd.f32 %v4908_v8, %v2475_v11  ;;  %v3972_v12 = vpop.f32.mrb[34].mxu0 }
 0x368   : > { %v2641_v13 = vadd.f32 %v3972_v12, %v4908_v8  ;;  %v2478_v14 = vpop.f32.mrb[35].mxu0  ;;  %v2672_v16 = vmax.f32 %v2640_v10, 0.0 }
 0x369   : > { %v2639_v15 = vadd.f32 %v4908_v8, %v2478_v14  ;;  %v2670_v20 = vmax.f32 %v2638_v3, 0.0 }
 0x36a   : > { %v2673_v17 = vmax.f32 %v2641_v13, 0.0 }
 0x36b   : > { %v2671_v22 = vmax.f32 %v2639_v15, 0.0 }
 0x36c   : > { %v2703_v24 = vpack.c.bf16 %v2673_v17, %v2672_v16 }
 0x36d   : > { %v2702_v25 = vpack.c.bf16 %v2671_v22, %v2670_v20  ;;  %v3975_v26 = vpop.f32.mrb[36].mxu0 }
 0x36e   : > { %v2644_v27 = vadd.f32 %v3975_v26, %v4908_v8  ;;  %v2491_v32 = vpop.f32.mrb[37].mxu0 }
 0x36f   : > { %v2642_v33 = vadd.f32 %v4908_v8, %v2491_v32  ;;  %v3976_v39 = vpop.f32.mrb[38].mxu0  ;;  %4015 = vmatprep.mubr.msk.bf16.mxu1 %vm823_vm4, %v2702_v25 }
 0x370   : > { %v2645_v40 = vadd.f32 %v3976_v39, %v4908_v8  ;;  %v2494_v42 = vpop.f32.mrb[39].mxu0  ;;  %4016 = vmatmul.mubr.msk.bf16.vlgmr.msra.gmra.mrb[96].mxu1 %vm823_vm4, %v2703_v24  ;;  %v2676_v44 = vmax.f32 %v2644_v27, 0.0 }
 0x371   : > { %v2643_v43 = vadd.f32 %v4908_v8, %v2494_v42  ;;  %v2674_v46 = vmax.f32 %v2642_v33, 0.0 }
 0x372   : > { %v2677_v45 = vmax.f32 %v2645_v40, 0.0 }
 0x373   : > { %v2675_v47 = vmax.f32 %v2643_v43, 0.0 }
 0x374   : > { %v2705_v35 = vpack.c.bf16 %v2677_v45, %v2676_v44 }
 0x375   : > { %v2704_v61 = vpack.c.bf16 %v2675_v47, %v2674_v46  ;;  %v3979_v7 = vpop.f32.mrb[40].mxu0 }
 0x376   : > { %v2648_v0 = vadd.f32 %v3979_v7, %v4908_v8  ;;  %v2507_v28 = vpop.f32.mrb[41].mxu0 }
 0x377   : > { %v2646_v48 = vadd.f32 %v4908_v8, %v2507_v28  ;;  %v3980_v30 = vpop.f32.mrb[42].mxu0  ;;  %4019 = vmatprep.mubr.msk.bf16.mxu1 %vm823_vm4, %v2704_v61 }
 0x378   : > { %v2649_v50 = vadd.f32 %v3980_v30, %v4908_v8  ;;  %v2510_v51 = vpop.f32.mrb[43].mxu0  ;;  %4020 = vmatmul.mubr.msk.bf16.gmra.mrb[100].mxu1 %vm823_vm4, %v2705_v35  ;;  %v2680_v55 = vmax.f32 %v2648_v0, 0.0 }
 0x379   : > { %v2647_v53 = vadd.f32 %v4908_v8, %v2510_v51  ;;  %v2678_v59 = vmax.f32 %v2646_v48, 0.0 }
 0x37a   : > { %v2681_v57 = vmax.f32 %v2649_v50, 0.0 }
 0x37b   : > { %v2679_v5 = vmax.f32 %v2647_v53, 0.0 }
 0x37c   : > { %v2707_v54 = vpack.c.bf16 %v2681_v57, %v2680_v55 }
 0x37d   : > { %v2706_v18 = vpack.c.bf16 %v2679_v5, %v2678_v59  ;;  %v3983_v21 = vpop.f32.mrb[44].mxu0 }
 0x37e   : > { %v2652_v34 = vadd.f32 %v3983_v21, %v4908_v8  ;;  %v2523_v31 = vpop.f32.mrb[45].mxu0 }
 0x37f   : > { %v2650_v63 = vadd.f32 %v4908_v8, %v2523_v31  ;;  %v3984_v6 = vpop.f32.mrb[46].mxu0  ;;  %4023 = vmatprep.mubr.msk.bf16.mxu1 %vm823_vm4, %v2706_v18 }
 0x380   : > { %v2653_v29 = vadd.f32 %v3984_v6, %v4908_v8  ;;  %v2526_v37 = vpop.f32.mrb[47].mxu0  ;;  %4024 = vmatmul.mubr.msk.bf16.gmra.mrb[104].mxu1 %vm823_vm4, %v2707_v54  ;;  %v2684_v52 = vmax.f32 %v2652_v34, 0.0 }
 0x381   : > { %v2651_v49 = vadd.f32 %v4908_v8, %v2526_v37  ;;  %v2682_v23 = vmax.f32 %v2650_v63, 0.0 }
 0x382   : > { %v2685_v19 = vmax.f32 %v2653_v29, 0.0 }
 0x383   : > { %v2683_v36 = vmax.f32 %v2651_v49, 0.0 }
 0x384   : > { %v2709_v38 = vpack.c.bf16 %v2685_v19, %v2684_v52  ;;  %v4958_v19 = vpop.xlane.xlu0 %1107 }
 0x385   : > { %v2708_v1 = vpack.c.bf16 %v2683_v36, %v2682_v23  ;;  %v3987_v56 = vpop.f32.mrb[48].mxu0  ;;  %v4960_v23 = vpop.xlane.xlu1 %1113 }
 0x386   : > { %v2656_v58 = vadd.f32 %v3987_v56, %v4908_v8  ;;  %v2539_v62 = vpop.f32.mrb[49].mxu0 }
 0x387   : > { %v2654_v2 = vadd.f32 %v4908_v8, %v2539_v62  ;;  %v3988_v4 = vpop.f32.mrb[50].mxu0  ;;  %4027 = vmatprep.mubr.msk.bf16.mxu1 %vm823_vm4, %v2708_v1 }
 0x388   : > { %v2657_v9 = vadd.f32 %v3988_v4, %v4908_v8  ;;  %v2542_v10 = vpop.f32.mrb[51].mxu0  ;;  %4028 = vmatmul.mubr.msk.bf16.gmra.mrb[108].mxu1 %vm823_vm4, %v2709_v38  ;;  %v2688_v3 = vmax.f32 %v2656_v58, 0.0  ;;  %v4962_v36 = vpop.xlane.xlu0 %1110 }
 0x389   : > { %v2655_v11 = vadd.f32 %v4908_v8, %v2542_v10  ;;  %v2686_v13 = vmax.f32 %v2654_v2, 0.0  ;;  %v4964_v38 = vpop.xlane.xlu1 %1116  ;;  %v4985_v10 = vld [vmem:[%s5524_s9 + $0x5] ss:$0 sm:$0xff] }
 0x38a   : > { %v2689_v12 = vmax.f32 %v2657_v9, 0.0 }
 0x38b   : > { %v2687_v14 = vmax.f32 %v2655_v11, 0.0 }
 0x38c   : > { %v2711_v15 = vpack.c.bf16 %v2689_v12, %v2688_v3  ;;  %v4966_v1 = vpop.xlane.xlu0 %1125 }
 0x38d   : > { %v2710_v16 = vpack.c.bf16 %v2687_v14, %v2686_v13  ;;  %v3991_v17 = vpop.f32.mrb[52].mxu0 }
 0x38e   : > { %v2660_v20 = vadd.f32 %v3991_v17, %v4908_v8  ;;  %v2555_v22 = vpop.f32.mrb[53].mxu0 }
 0x38f   : > { %v2658_v24 = vadd.f32 %v4908_v8, %v2555_v22  ;;  %v3992_v25 = vpop.f32.mrb[54].mxu0  ;;  %4031 = vmatprep.mubr.msk.bf16.mxu1 %vm823_vm4, %v2710_v16  ;;  %v4994_v16 = vld [vmem:[%s5524_s9 + $0x8] ss:$0 sm:$0xff] }
 0x390   : > { %v2661_v26 = vadd.f32 %v3992_v25, %v4908_v8  ;;  %v2558_v27 = vpop.f32.mrb[55].mxu0  ;;  %4032 = vmatmul.mubr.msk.bf16.gmra.mrb[112].mxu1 %vm823_vm4, %v2711_v15  ;;  %v2692_v33 = vmax.f32 %v2660_v20, 0.0  ;;  %v4970_v56 = vpop.xlane.xlu0 %1119 }
 0x391   : > { %v2659_v32 = vadd.f32 %v4908_v8, %v2558_v27  ;;  %v2690_v40 = vmax.f32 %v2658_v24, 0.0 }
 0x392   : > { %v2693_v39 = vmax.f32 %v2661_v26, 0.0 }
 0x393   : > { %v2691_v42 = vmax.f32 %v2659_v32, 0.0 }
 0x394   : > { %v2713_v43 = vpack.c.bf16 %v2693_v39, %v2692_v33  ;;  %v4974_v62 = vpop.xlane.xlu0 %1137 }
 0x395   : > { %v2712_v44 = vpack.c.bf16 %v2691_v42, %v2690_v40  ;;  %v3995_v45 = vpop.f32.mrb[56].mxu0 }
 0x396   : > { %v2664_v46 = vadd.f32 %v3995_v45, %v4908_v8  ;;  %v2571_v47 = vpop.f32.mrb[57].mxu0 }
 0x397   : > { %v2662_v35 = vadd.f32 %v4908_v8, %v2571_v47  ;;  %v3996_v61 = vpop.f32.mrb[58].mxu0  ;;  %4035 = vmatprep.mubr.msk.bf16.mxu1 %vm823_vm4, %v2712_v44 }
 0x398   : > { %v2665_v7 = vadd.f32 %v3996_v61, %v4908_v8  ;;  %v2574_v0 = vpop.f32.mrb[59].mxu0  ;;  %4036 = vmatmul.mubr.msk.bf16.gmra.mrb[116].mxu1 %vm823_vm4, %v2713_v43  ;;  %v2696_v48 = vmax.f32 %v2664_v46, 0.0  ;;  %v4978_v4 = vpop.xlane.xlu0 %1131 }
 0x399   : > { %v2663_v28 = vadd.f32 %v4908_v8, %v2574_v0  ;;  %v2694_v50 = vmax.f32 %v2662_v35, 0.0 }
 0x39a   : > { %v2697_v30 = vmax.f32 %v2665_v7, 0.0 }
 0x39b   : > { %v2695_v51 = vmax.f32 %v2663_v28, 0.0 }
 0x39c   : > { %v2715_v53 = vpack.c.bf16 %v2697_v30, %v2696_v48  ;;  %v4987_v3 = vpop.xlane.xlu0 %1149 }
 0x39d   : > { %v2714_v55 = vpack.c.bf16 %v2695_v51, %v2694_v50  ;;  %v3999_v57 = vpop.f32.mrb[60].mxu0 }
 0x39e   : > { %v2668_v59 = vadd.f32 %v3999_v57, %v4908_v8  ;;  %v2587_v5 = vpop.f32.mrb[61].mxu0 }
 0x39f   : > { %v2666_v54 = vadd.f32 %v4908_v8, %v2587_v5  ;;  %v4000_v18 = vpop.f32.mrb[62].mxu0  ;;  %4039 = vmatprep.mubr.msk.bf16.mxu1 %vm823_vm4, %v2714_v55 }
 0x3a0   : > { %v2669_v21 = vadd.f32 %v4000_v18, %v4908_v8  ;;  %v2590_v34 = vpop.f32.mrb[63].mxu0  ;;  %4040 = vmatmul.mubr.msk.bf16.gmra.mrb[120].mxu1 %vm823_vm4, %v2715_v53  ;;  %v2700_v63 = vmax.f32 %v2668_v59, 0.0  ;;  %v5001_v39 = vpop.xlane.xlu0 %1143 }
 0x3a1   : > { %v2667_v31 = vadd.f32 %v4908_v8, %v2590_v34  ;;  %v2698_v29 = vmax.f32 %v2666_v54, 0.0  ;;  %v4968_v8 = vpop.xlane.xlu1 %1128 }
 0x3a2   : > { %v2701_v6 = vmax.f32 %v2669_v21, 0.0 }
 0x3a3   : > { %v2699_v37 = vmax.f32 %v2667_v31, 0.0 }
 0x3a4   : > { %v2717_v49 = vpack.c.bf16 %v2701_v6, %v2700_v63  ;;  %v5015_v55 = vpop.xlane.xlu0 %1161 }
 0x3a5   : > { %v2716_v52 = vpack.c.bf16 %v2699_v37, %v2698_v29  ;;  %v4972_v58 = vpop.xlane.xlu1 %1122 }
 0x3a7   : > { %4043 = vmatprep.mubr.msk.bf16.mxu1 %vm823_vm4, %v2716_v52 }
 0x3a8   : > { %4044 = vmatmul.mubr.msk.bf16.gmra.mrb[124].mxu1 %vm823_vm4, %v2717_v49 }
 0x3a9   : > { %v4976_v2 = vpop.xlane.xlu1 %1140 }
 0x3ad   : > { %v4980_v9 = vpop.xlane.xlu1 %1134 }
 0x3b1   : > { %v4996_v17 = vpop.xlane.xlu1 %1152 }
 0x3b5   : > { %v5006_v45 = vpop.xlane.xlu1 %1146 }
 0x3b9   : > { %v5019_v18 = vpop.xlane.xlu1 %1164 }
 0x443   : > { %v4017_v11 = vpop.f32.mrb[96].mxu1 }
 0x444   : > { %v2868_v12 = vadd.f32 %v4017_v11, %v4985_v10  ;;  %v2859_v13 = vpop.f32.mrb[97].mxu1 }
 0x445   : > { %v2860_v14 = vadd.f32 %v4985_v10, %v2859_v13  ;;  %v4018_v15 = vpop.f32.mrb[98].mxu1 }
 0x446   : > { %v2988_v20 = vmax.f32 %v2868_v12, 0.0  ;;  %v2871_v22 = vadd.f32 %v4018_v15, %v4985_v10  ;;  %v2862_v24 = vpop.f32.mrb[99].mxu1  ;;  %v5028_v12 = vpop.xlane.xlu0 %1155 }
 0x447   : > { %v2986_v25 = vmax.f32 %v2860_v14, 0.0  ;;  %v2863_v26 = vadd.f32 %v4985_v10, %v2862_v24 }
 0x448   : > { %v2989_v27 = vmax.f32 %v2871_v22, 0.0  ;;  %v3024_v32 = vmul.f32 %v4994_v16, %v2988_v20 }
 0x449   : > { %v2987_v33 = vmax.f32 %v2863_v26, 0.0  ;;  %v3022_v43 = vmul.f32 %v4994_v16, %v2986_v25  ;;  %v5033_v25 = vpop.xlane.xlu1 %1158 }
 0x44a   : > { %v3060_v40 = vsel %vm1105_vm7, %v3024_v32, 0.0  ;;  %v3025_v42 = vmul.f32 %v4994_v16, %v2989_v27 }
 0x44b   : > { %v4021_v44 = vpop.f32.mrb[100].mxu1  ;;  %3061 = vadd.xlane.f32.xlu0 %v3060_v40  ;;  %v3023_v61 = vmul.f32 %v4994_v16, %v2987_v33  ;;  %v3054_v50 = vsel %vm1105_vm7, %v3022_v43, 0.0 }
 0x44c   : > { %v2884_v46 = vadd.f32 %v4021_v44, %v4985_v10  ;;  %v2875_v47 = vpop.f32.mrb[101].mxu1  ;;  %v3063_v35 = vsel %vm1105_vm7, %v3025_v42, 0.0 }
 0x44d   : > { %v2876_v7 = vadd.f32 %v4985_v10, %v2875_v47  ;;  %3064 = vadd.xlane.f32.xlu1 %v3063_v35  ;;  %v4022_v0 = vpop.f32.mrb[102].mxu1  ;;  %v3057_v59 = vsel %vm1105_vm7, %v3023_v61, 0.0 }
 0x44e   : > { %v2992_v28 = vmax.f32 %v2884_v46, 0.0  ;;  %v2887_v48 = vadd.f32 %v4022_v0, %v4985_v10  ;;  %v2878_v30 = vpop.f32.mrb[103].mxu1  ;;  %v5040_v46 = vpop.xlane.xlu0 %1173 }
 0x44f   : > { %v2990_v51 = vmax.f32 %v2876_v7, 0.0  ;;  %v2879_v53 = vadd.f32 %v4985_v10, %v2878_v30  ;;  %3055 = vadd.xlane.f32.xlu0 %v3054_v50 }
 0x450   : > { %v2993_v57 = vmax.f32 %v2887_v48, 0.0  ;;  %v3028_v5 = vmul.f32 %v4994_v16, %v2992_v28  ;;  %v5046_v48 = vpop.xlane.xlu1 %1176 }
 0x451   : > { %v2991_v54 = vmax.f32 %v2879_v53, 0.0  ;;  %3058 = vadd.xlane.f32.xlu1 %v3057_v59  ;;  %v3026_v31 = vmul.f32 %v4994_v16, %v2990_v51 }
 0x452   : > { %v3072_v21 = vsel %vm1105_vm7, %v3028_v5, 0.0  ;;  %v3029_v34 = vmul.f32 %v4994_v16, %v2993_v57 }
 0x453   : > { %v4025_v63 = vpop.f32.mrb[104].mxu1  ;;  %3073 = vadd.xlane.f32.xlu0 %v3072_v21  ;;  %v3027_v49 = vmul.f32 %v4994_v16, %v2991_v54  ;;  %v3066_v20 = vsel %vm1105_vm7, %v3026_v31, 0.0  ;;  %v5053_v31 = vpop.xlane.xlu0 %1167 }
 0x454   : > { %v2900_v6 = vadd.f32 %v4025_v63, %v4985_v10  ;;  %v2891_v29 = vpop.f32.mrb[105].mxu1  ;;  %v3075_v37 = vsel %vm1105_vm7, %v3029_v34, 0.0 }
 0x455   : > { %v2892_v52 = vadd.f32 %v4985_v10, %v2891_v29  ;;  %3076 = vadd.xlane.f32.xlu1 %v3075_v37  ;;  %v4026_v11 = vpop.f32.mrb[106].mxu1  ;;  %v3069_v27 = vsel %vm1105_vm7, %v3027_v49, 0.0  ;;  %v5058_v49 = vpop.xlane.xlu1 %1170 }
 0x456   : > { %v2996_v13 = vmax.f32 %v2900_v6, 0.0  ;;  %v2903_v14 = vadd.f32 %v4026_v11, %v4985_v10  ;;  %v2894_v15 = vpop.f32.mrb[107].mxu1 }
 0x457   : > { %v2994_v22 = vmax.f32 %v2892_v52, 0.0  ;;  %v2895_v24 = vadd.f32 %v4985_v10, %v2894_v15  ;;  %3067 = vadd.xlane.f32.xlu0 %v3066_v20 }
 0x458   : > { %v2997_v26 = vmax.f32 %v2903_v14, 0.0  ;;  %v3032_v32 = vmul.f32 %v4994_v16, %v2996_v13 }
 0x459   : > { %v2995_v33 = vmax.f32 %v2895_v24, 0.0  ;;  %3070 = vadd.xlane.f32.xlu1 %v3069_v27  ;;  %v3030_v43 = vmul.f32 %v4994_v16, %v2994_v22 }
 0x45a   : > { %v3084_v40 = vsel %vm1105_vm7, %v3032_v32, 0.0  ;;  %v3033_v42 = vmul.f32 %v4994_v16, %v2997_v26 }
 0x45b   : > { %v4029_v44 = vpop.f32.mrb[108].mxu1  ;;  %3085 = vadd.xlane.f32.xlu0 %v3084_v40  ;;  %v3031_v7 = vmul.f32 %v4994_v16, %v2995_v33  ;;  %v3078_v53 = vsel %vm1105_vm7, %v3030_v43, 0.0  ;;  %v5067_v40 = vpop.xlane.xlu0 %1185 }
 0x45c   : > { %v2916_v47 = vadd.f32 %v4029_v44, %v4985_v10  ;;  %v2907_v35 = vpop.f32.mrb[109].mxu1  ;;  %v3087_v61 = vsel %vm1105_vm7, %v3033_v42, 0.0 }
 0x45d   : > { %v2908_v0 = vadd.f32 %v4985_v10, %v2907_v35  ;;  %3088 = vadd.xlane.f32.xlu1 %v3087_v61  ;;  %v4030_v28 = vpop.f32.mrb[110].mxu1  ;;  %v3081_v54 = vsel %vm1105_vm7, %v3031_v7, 0.0  ;;  %v5071_v35 = vpop.xlane.xlu1 %1188 }
 0x45e   : > { %v3000_v30 = vmax.f32 %v2916_v47, 0.0  ;;  %v2919_v50 = vadd.f32 %v4030_v28, %v4985_v10  ;;  %v2910_v51 = vpop.f32.mrb[111].mxu1 }
 0x45f   : > { %v2998_v57 = vmax.f32 %v2908_v0, 0.0  ;;  %v2911_v59 = vadd.f32 %v4985_v10, %v2910_v51  ;;  %3079 = vadd.xlane.f32.xlu0 %v3078_v53 }
 0x460   : > { %v3001_v5 = vmax.f32 %v2919_v50, 0.0  ;;  %v3036_v21 = vmul.f32 %v4994_v16, %v3000_v30 }
 0x461   : > { %v2999_v34 = vmax.f32 %v2911_v59, 0.0  ;;  %3082 = vadd.xlane.f32.xlu1 %v3081_v54  ;;  %v3034_v29 = vmul.f32 %v4994_v16, %v2998_v57 }
 0x462   : > { %v3096_v63 = vsel %vm1105_vm7, %v3036_v21, 0.0  ;;  %v3037_v6 = vmul.f32 %v4994_v16, %v3001_v5  ;;  %v5080_v5 = vpop.xlane.xlu0 %1179 }
 0x463   : > { %v4033_v37 = vpop.f32.mrb[112].mxu1  ;;  %3097 = vadd.xlane.f32.xlu0 %v3096_v63  ;;  %v3035_v14 = vmul.f32 %v4994_v16, %v2999_v34  ;;  %v3090_v27 = vsel %vm1105_vm7, %v3034_v29, 0.0  ;;  %5526 = vst [vmem:[#allocation2_spill] sm:$0xff] %v5080_v5 }
 0x464   : > { %v2932_v52 = vadd.f32 %v4033_v37, %v4985_v10  ;;  %v2923_v11 = vpop.f32.mrb[113].mxu1  ;;  %v3099_v13 = vsel %vm1105_vm7, %v3037_v6, 0.0  ;;  %v5085_v37 = vpop.xlane.xlu1 %1182 }
 0x465   : > { %v2924_v15 = vadd.f32 %v4985_v10, %v2923_v11  ;;  %3100 = vadd.xlane.f32.xlu1 %v3099_v13  ;;  %v4034_v20 = vpop.f32.mrb[114].mxu1  ;;  %v3093_v43 = vsel %vm1105_vm7, %v3035_v14, 0.0  ;;  %5527 = vst [vmem:[#allocation3_spill] sm:$0xff] %v5085_v37 }
 0x466   : > { %v3004_v22 = vmax.f32 %v2932_v52, 0.0  ;;  %v2935_v24 = vadd.f32 %v4034_v20, %v4985_v10  ;;  %v2926_v26 = vpop.f32.mrb[115].mxu1 }
 0x467   : > { %v3002_v32 = vmax.f32 %v2924_v15, 0.0  ;;  %v2927_v33 = vadd.f32 %v4985_v10, %v2926_v26  ;;  %3091 = vadd.xlane.f32.xlu0 %v3090_v27  ;;  %v5092_v26 = vpop.xlane.xlu0 %1197 }
 0x468   : > { %v3005_v42 = vmax.f32 %v2935_v24, 0.0  ;;  %v3040_v44 = vmul.f32 %v4994_v16, %v3004_v22  ;;  %5528 = vst [vmem:[#allocation4_spill] sm:$0xff] %v5092_v26 }
 0x469   : > { %v3003_v47 = vmax.f32 %v2927_v33, 0.0  ;;  %3094 = vadd.xlane.f32.xlu1 %v3093_v43  ;;  %v3038_v0 = vmul.f32 %v4994_v16, %v3002_v32 }
 0x46a   : > { %v3108_v61 = vsel %vm1105_vm7, %v3040_v44, 0.0  ;;  %v3041_v7 = vmul.f32 %v4994_v16, %v3005_v42 }
 0x46b   : > { %v4037_v28 = vpop.f32.mrb[116].mxu1  ;;  %3109 = vadd.xlane.f32.xlu0 %v3108_v61  ;;  %v3039_v53 = vmul.f32 %v4994_v16, %v3003_v47  ;;  %v3102_v63 = vsel %vm1105_vm7, %v3038_v0, 0.0  ;;  %v5098_v47 = vpop.xlane.xlu1 %1200 }
 0x46c   : > { %v2948_v30 = vadd.f32 %v4037_v28, %v4985_v10  ;;  %v2939_v50 = vpop.f32.mrb[117].mxu1  ;;  %v3111_v51 = vsel %vm1105_vm7, %v3041_v7, 0.0  ;;  %5529 = vst [vmem:[#allocation5_spill] sm:$0xff] %v5098_v47 }
 0x46d   : > { %v2940_v57 = vadd.f32 %v4985_v10, %v2939_v50  ;;  %3112 = vadd.xlane.f32.xlu1 %v3111_v51  ;;  %v4038_v59 = vpop.f32.mrb[118].mxu1  ;;  %v3105_v11 = vsel %vm1105_vm7, %v3039_v53, 0.0 }
 0x46e   : > { %v3008_v54 = vmax.f32 %v2948_v30, 0.0  ;;  %v2951_v21 = vadd.f32 %v4038_v59, %v4985_v10  ;;  %v2942_v34 = vpop.f32.mrb[119].mxu1 }
 0x46f   : > { %v3006_v6 = vmax.f32 %v2940_v57, 0.0  ;;  %v2943_v29 = vadd.f32 %v4985_v10, %v2942_v34  ;;  %3103 = vadd.xlane.f32.xlu0 %v3102_v63 }
 0x470   : > { %v3009_v52 = vmax.f32 %v2951_v21, 0.0  ;;  %v3044_v13 = vmul.f32 %v4994_v16, %v3008_v54  ;;  %v5105_v54 = vpop.xlane.xlu0 %1191 }
 0x471   : > { %v3007_v14 = vmax.f32 %v2943_v29, 0.0  ;;  %3106 = vadd.xlane.f32.xlu1 %v3105_v11  ;;  %v3042_v22 = vmul.f32 %v4994_v16, %v3006_v6  ;;  %5530 = vst [vmem:[#allocation6_spill] sm:$0xff] %v5105_v54  ;;  %v5110_v29 = vpop.xlane.xlu1 %1194 }
 0x472   : > { %v3120_v15 = vsel %vm1105_vm7, %v3044_v13, 0.0  ;;  %v3045_v20 = vmul.f32 %v4994_v16, %v3009_v52  ;;  %5531 = vst [vmem:[#allocation7_spill] sm:$0xff] %v5110_v29 }
 0x473   : > { %v4041_v24 = vpop.f32.mrb[120].mxu1  ;;  %3121 = vadd.xlane.f32.xlu0 %v3120_v15  ;;  %v3043_v42 = vmul.f32 %v4994_v16, %v3007_v14  ;;  %v3114_v28 = vsel %vm1105_vm7, %v3042_v22, 0.0 }
 0x474   : > { %v2964_v27 = vadd.f32 %v4041_v24, %v4985_v10  ;;  %v2955_v32 = vpop.f32.mrb[121].mxu1  ;;  %v3123_v33 = vsel %vm1105_vm7, %v3045_v20, 0.0 }
 0x475   : > { %v2956_v43 = vadd.f32 %v4985_v10, %v2955_v32  ;;  %3124 = vadd.xlane.f32.xlu1 %v3123_v33  ;;  %v4042_v44 = vpop.f32.mrb[122].mxu1  ;;  %v3117_v53 = vsel %vm1105_vm7, %v3043_v42, 0.0 }
 0x476   : > { %v3012_v61 = vmax.f32 %v2964_v27, 0.0  ;;  %v2967_v7 = vadd.f32 %v4042_v44, %v4985_v10  ;;  %v2958_v0 = vpop.f32.mrb[123].mxu1 }
 0x477   : > { %v3010_v30 = vmax.f32 %v2956_v43, 0.0  ;;  %v2959_v50 = vadd.f32 %v4985_v10, %v2958_v0  ;;  %3115 = vadd.xlane.f32.xlu0 %v3114_v28  ;;  %v1819_v43 = vpop.xlane.xlu0 %1818  ;;  %v1822_v28 = vpop.xlane.xlu1 %1821 }
 0x478   : > { %v3013_v51 = vmax.f32 %v2967_v7, 0.0  ;;  %v3048_v57 = vmul.f32 %v4994_v16, %v3012_v61 }
 0x479   : > { %v3011_v59 = vmax.f32 %v2959_v50, 0.0  ;;  %3118 = vadd.xlane.f32.xlu1 %v3117_v53  ;;  %v3046_v63 = vmul.f32 %v4994_v16, %v3010_v30 }
 0x47a   : > { %v3132_v21 = vsel %vm1105_vm7, %v3048_v57, 0.0  ;;  %v3049_v34 = vmul.f32 %v4994_v16, %v3013_v51 }
 0x47b   : > { %v4045_v6 = vpop.f32.mrb[124].mxu1  ;;  %3133 = vadd.xlane.f32.xlu0 %v3132_v21  ;;  %v3047_v14 = vmul.f32 %v4994_v16, %v3011_v59  ;;  %v3126_v32 = vsel %vm1105_vm7, %v3046_v63, 0.0  ;;  %v1813_v57 = vpop.xlane.xlu0 %1812  ;;  %v1901_v63 = vsel %vm1105_vm7, %v4802_v60, 0.0 }
 0x47c   : > { %v2980_v52 = vadd.f32 %v4045_v6, %v4985_v10  ;;  %v2971_v11 = vpop.f32.mrb[125].mxu1  ;;  %v3135_v13 = vsel %vm1105_vm7, %v3049_v34, 0.0  ;;  %v5127_v21 = vpop.xlane.xlu1 %1815 }
 0x47d   : > { %v2972_v15 = vadd.f32 %v4985_v10, %v2971_v11  ;;  %3136 = vadd.xlane.f32.xlu1 %v3135_v13  ;;  %v4046_v20 = vpop.f32.mrb[126].mxu1  ;;  %v3129_v61 = vsel %vm1105_vm7, %v3047_v14, 0.0 }
 0x47e   : > { %v3016_v22 = vmax.f32 %v2980_v52, 0.0  ;;  %v2983_v24 = vadd.f32 %v4046_v20, %v4985_v10  ;;  %v2974_v27 = vpop.f32.mrb[127].mxu1  ;;  %v1904_v52 = vsel %vm1105_vm7, %v4806_v41, 0.0 }
 0x47f   : > { %v3014_v33 = vmax.f32 %v2972_v15, 0.0  ;;  %v2975_v42 = vadd.f32 %v4985_v10, %v2974_v27  ;;  %3127 = vadd.xlane.f32.xlu0 %v3126_v32  ;;  %v5132_v6 = vpop.xlane.xlu0 %1830 }
 0x480   : > { %v3017_v44 = vmax.f32 %v2983_v24, 0.0  ;;  %v3052_v7 = vmul.f32 %v4994_v16, %v3016_v22 }
 0x481   : > { %v3015_v0 = vmax.f32 %v2975_v42, 0.0  ;;  %3130 = vadd.xlane.f32.xlu1 %v3129_v61  ;;  %v3050_v51 = vmul.f32 %v4994_v16, %v3014_v33 }
 0x482   : > { %v3144_v30 = vsel %vm1105_vm7, %v3052_v7, 0.0  ;;  %v3053_v50 = vmul.f32 %v4994_v16, %v3017_v44 }
 0x483   : > { %3145 = vadd.xlane.f32.xlu0 %v3144_v30  ;;  %v3051_v10 = vmul.f32 %v4994_v16, %v3015_v0  ;;  %v3138_v59 = vsel %vm1105_vm7, %v3050_v51, 0.0  ;;  %v5136_v16 = vpop.xlane.xlu1 %1833  ;;  %v5138_v11 = vpop.xlane.xlu0 %1824 }
 0x484   : > { %v3147_v53 = vsel %vm1105_vm7, %v3053_v50, 0.0 }
 0x485   : > { %3148 = vadd.xlane.f32.xlu1 %v3147_v53  ;;  %v3141_v34 = vsel %vm1105_vm7, %v3051_v10, 0.0 }
 0x487   : > { %3139 = vadd.xlane.f32.xlu0 %v3138_v59  ;;  %v5140_v13 = vpop.xlane.xlu1 %1827  ;;  %v5142_v14 = vpop.xlane.xlu0 %1842 }
 0x489   : > { %3142 = vadd.xlane.f32.xlu1 %v3141_v34  ;;  %v5187_v34 = vld [vmem:[%s5524_s9 + $0x9] ss:$0 sm:$0xff] }
 0x48a   : > { %v1208_v26 = vadd.f32 %v5187_v34, %v4960_v23  ;;  %v1909_v54 = vadd.f32 %v5187_v34, %v1819_v43  ;;  %v1206_v37 = vadd.f32 %v5187_v34, %v4958_v19 }
 0x48b   : > { %1902 = vadd.xlane.f32.xlu0 %v1901_v63  ;;  %v5144_v15 = vpop.xlane.xlu1 %1845  ;;  %v5146_v20 = vpop.xlane.xlu0 %1836 }
 0x48d   : > { %1905 = vadd.xlane.f32.xlu1 %v1904_v52 }
 0x48f   : > { %v5148_v60 = vpop.xlane.xlu1 %1839  ;;  %v5150_v22 = vpop.xlane.xlu0 %1854 }
 0x493   : > { %v5152_v24 = vpop.xlane.xlu1 %1857  ;;  %v5154_v41 = vpop.xlane.xlu0 %1848 }
 0x497   : > { %v5156_v27 = vpop.xlane.xlu1 %1851  ;;  %v5158_v32 = vpop.xlane.xlu0 %1866 }
 0x49b   : > { %v5160_v33 = vpop.xlane.xlu1 %1869  ;;  %v5162_v42 = vpop.xlane.xlu0 %1860 }
 0x49f   : > { %v5164_v44 = vpop.xlane.xlu1 %1863  ;;  %v5166_v61 = vpop.xlane.xlu0 %1878 }
 0x4a3   : > { %v5168_v7 = vpop.xlane.xlu1 %1881  ;;  %v5170_v0 = vpop.xlane.xlu0 %1872 }
 0x4a7   : > { %v5172_v30 = vpop.xlane.xlu1 %1875  ;;  %v5174_v50 = vpop.xlane.xlu0 %1890 }
 0x4ab   : > { %v5176_v51 = vpop.xlane.xlu1 %1893  ;;  %v5178_v53 = vpop.xlane.xlu0 %1884 }
 0x4ac   : > { %5532 = vst [vmem:[#allocation8_spill] sm:$0xff] %v5176_v51  ;;  %5533 = vst [vmem:[#allocation9_spill] sm:$0xff] %v5178_v53  ;;  %v1907_v51 = vadd.f32 %v5187_v34, %v1813_v57 }
 0x4af   : > { %v5180_v10 = vpop.xlane.xlu1 %1887  ;;  %v5182_v59 = vpop.xlane.xlu0 %1896 }
 0x4b0   : > { %5534 = vst [vmem:[#allocation10_spill] sm:$0xff] %v5180_v10  ;;  %5535 = vst [vmem:[#allocation11_spill] sm:$0xff] %v5182_v59 }
 0x4b3   : > { %v5189_v63 = vpop.xlane.xlu1 %1899 }
 0x4b4   : > { %5536 = vst [vmem:[#allocation12_spill] sm:$0xff] %v5189_v63  ;;  %v1209_v63 = vadd.f32 %v5187_v34, %v4964_v38 }
 0x4d8   : > { %v3062_v52 = vpop.xlane.xlu0 %3061 }
 0x4d9   : > { %v3152_v29 = vadd.f32 %v5187_v34, %v3062_v52  ;;  %v1910_v52 = vadd.f32 %v5187_v34, %v1822_v28 }
 0x4da   : > { %v3065_v59 = vpop.xlane.xlu1 %3064 }
 0x4db   : > { %v3185_v47 = vsel %vm3182_vm8, %v3152_v29, %v1208_v26  ;;  %v3153_v23 = vadd.f32 %v5187_v34, %v3065_v59 }
 0x4dc   : > { %v3218_v43 = vsel %vm3215_vm9, %v3185_v47, %v1909_v54  ;;  %v3056_v10 = vpop.xlane.xlu0 %3055  ;;  %v1207_v47 = vadd.f32 %v5187_v34, %v4962_v36 }
 0x4dd   : > { %v3251_v53 = vsel %vm3248_vm10, %v3218_v43, 0.0  ;;  %v3186_v5 = vsel %vm3182_vm8, %v3153_v23, %v1209_v63  ;;  %v3150_v38 = vadd.f32 %v5187_v34, %v3056_v10  ;;  %v1908_v10 = vadd.f32 %v5187_v34, %v5127_v21 }
 0x4de   : > { %3284 = vst.msk [vmem:[%s5199_s20 + $0x10] sm:$0xff] %vm3281_vm11, %v3251_v53  ;;  %v3219_v26 = vsel %vm3215_vm9, %v3186_v5, %v1910_v52  ;;  %v3059_v29 = vpop.xlane.xlu1 %3058  ;;  %v1212_v5 = vadd.f32 %v5187_v34, %v4966_v1  ;;  %v1913_v63 = vadd.f32 %v5187_v34, %v5132_v6 }
 0x4df   : > { %v3252_v54 = vsel %vm3248_vm10, %v3219_v26, 0.0  ;;  %v3183_v19 = vsel %vm3182_vm8, %v3150_v38, %v1206_v37  ;;  %v3151_v28 = vadd.f32 %v5187_v34, %v3059_v29  ;;  %v1914_v38 = vadd.f32 %v5187_v34, %v5136_v16 }
 0x4e0   : > { %3285 = vst.msk [vmem:[%s5199_s20 + $0x18] sm:$0xff] %vm3281_vm11, %v3252_v54  ;;  %v3216_v57 = vsel %vm3215_vm9, %v3183_v19, %v1907_v51  ;;  %v3074_v53 = vpop.xlane.xlu0 %3073  ;;  %v1213_v51 = vadd.f32 %v5187_v34, %v4968_v8  ;;  %v1210_v29 = vadd.f32 %v5187_v34, %v4970_v56  ;;  %v1911_v19 = vadd.f32 %v5187_v34, %v5138_v11 }
 0x4e1   : > { %v3249_v36 = vsel %vm3248_vm10, %v3216_v57, 0.0  ;;  %v3184_v59 = vsel %vm3182_vm8, %v3151_v28, %v1207_v47  ;;  %v3156_v37 = vadd.f32 %v5187_v34, %v3074_v53 }
 0x4e2   : > { %3282 = vst.msk [vmem:[%s5199_s20] sm:$0xff] %vm3281_vm11, %v3249_v36  ;;  %v3217_v21 = vsel %vm3215_vm9, %v3184_v59, %v1908_v10  ;;  %v3077_v23 = vpop.xlane.xlu1 %3076  ;;  %v1211_v10 = vadd.f32 %v5187_v34, %v4972_v58  ;;  %v1216_v59 = vadd.f32 %v5187_v34, %v4974_v62 }
 0x4e3   : > { %v3250_v1 = vsel %vm3248_vm10, %v3217_v21, 0.0  ;;  %v3189_v52 = vsel %vm3182_vm8, %v3156_v37, %v1212_v5  ;;  %v3157_v43 = vadd.f32 %v5187_v34, %v3077_v23  ;;  %v1912_v5 = vadd.f32 %v5187_v34, %v5140_v13 }
 0x4e4   : > { %3283 = vst.msk [vmem:[%s5199_s20 + $0x8] sm:$0xff] %vm3281_vm11, %v3250_v1  ;;  %v3222_v6 = vsel %vm3215_vm9, %v3189_v52, %v1913_v63  ;;  %v3068_v26 = vpop.xlane.xlu0 %3067  ;;  %v1917_v21 = vadd.f32 %v5187_v34, %v5142_v14 }
 0x4e5   : > { %v3255_v8 = vsel %vm3248_vm10, %v3222_v6, 0.0  ;;  %v3190_v47 = vsel %vm3182_vm8, %v3157_v43, %v1213_v51  ;;  %v3154_v54 = vadd.f32 %v5187_v34, %v3068_v26  ;;  %v1217_v51 = vadd.f32 %v5187_v34, %v4976_v2 }
 0x4e6   : > { %3288 = vst.msk [vmem:[%s5199_s20 + $0x30] sm:$0xff] %vm3281_vm11, %v3255_v8  ;;  %v3223_v16 = vsel %vm3215_vm9, %v3190_v47, %v1914_v38  ;;  %v3071_v28 = vpop.xlane.xlu1 %3070  ;;  %v1918_v43 = vadd.f32 %v5187_v34, %v5144_v15  ;;  %v1214_v6 = vadd.f32 %v5187_v34, %v4978_v4  ;;  %v1915_v8 = vadd.f32 %v5187_v34, %v5146_v20 }
 0x4e7   : > { %v3256_v56 = vsel %vm3248_vm10, %v3223_v16, 0.0  ;;  %v3187_v57 = vsel %vm3182_vm8, %v3154_v54, %v1210_v29  ;;  %v3155_v53 = vadd.f32 %v5187_v34, %v3071_v28  ;;  %v1215_v54 = vadd.f32 %v5187_v34, %v4980_v9 }
 0x4e8   : > { %3289 = vst.msk [vmem:[%s5199_s20 + $0x38] sm:$0xff] %vm3281_vm11, %v3256_v56  ;;  %v3220_v11 = vsel %vm3215_vm9, %v3187_v57, %v1911_v19  ;;  %v3086_v36 = vpop.xlane.xlu0 %3085  ;;  %v1916_v28 = vadd.f32 %v5187_v34, %v5148_v60  ;;  %v1220_v56 = vadd.f32 %v5187_v34, %v4987_v3 }
 0x4e9   : > { %v3253_v58 = vsel %vm3248_vm10, %v3220_v11, 0.0  ;;  %v3188_v37 = vsel %vm3182_vm8, %v3155_v53, %v1211_v10  ;;  %v3160_v63 = vadd.f32 %v5187_v34, %v3086_v36  ;;  %v1221_v36 = vadd.f32 %v5187_v34, %v4996_v17 }
 0x4ea   : > { %3286 = vst.msk [vmem:[%s5199_s20 + $0x20] sm:$0xff] %vm3281_vm11, %v3253_v58  ;;  %v3221_v13 = vsel %vm3215_vm9, %v3188_v37, %v1912_v5  ;;  %v3089_v23 = vpop.xlane.xlu1 %3088  ;;  %v1921_v5 = vadd.f32 %v5187_v34, %v5150_v22  ;;  %v1922_v37 = vadd.f32 %v5187_v34, %v5152_v24 }
 0x4eb   : > { %v3254_v62 = vsel %vm3248_vm10, %v3221_v13, 0.0  ;;  %v3193_v1 = vsel %vm3182_vm8, %v3160_v63, %v1216_v59  ;;  %v3161_v52 = vadd.f32 %v5187_v34, %v3089_v23 }
 0x4ec   : > { %3287 = vst.msk [vmem:[%s5199_s20 + $0x28] sm:$0xff] %vm3281_vm11, %v3254_v62  ;;  %v3226_v14 = vsel %vm3215_vm9, %v3193_v1, %v1917_v21  ;;  %v3080_v38 = vpop.xlane.xlu0 %3079  ;;  %v1218_v21 = vadd.f32 %v5187_v34, %v5001_v39  ;;  %v1219_v1 = vadd.f32 %v5187_v34, %v5006_v45 }
 0x4ed   : > { %v3259_v2 = vsel %vm3248_vm10, %v3226_v14, 0.0  ;;  %v3194_v26 = vsel %vm3182_vm8, %v3161_v52, %v1217_v51  ;;  %v3158_v29 = vadd.f32 %v5187_v34, %v3080_v38  ;;  %v1919_v51 = vadd.f32 %v5187_v34, %v5154_v41 }
 0x4ee   : > { %3292 = vst.msk [vmem:[%s5199_s20 + $0x50] sm:$0xff] %vm3281_vm11, %v3259_v2  ;;  %v3227_v15 = vsel %vm3215_vm9, %v3194_v26, %v1918_v43  ;;  %v3083_v47 = vpop.xlane.xlu1 %3082  ;;  %v1920_v14 = vadd.f32 %v5187_v34, %v5156_v27 }
 0x4ef   : > { %v3260_v4 = vsel %vm3248_vm10, %v3227_v15, 0.0  ;;  %v3191_v19 = vsel %vm3182_vm8, %v3158_v29, %v1214_v6  ;;  %v3159_v16 = vadd.f32 %v5187_v34, %v3083_v47  ;;  %v1224_v6 = vadd.f32 %v5187_v34, %v5015_v55 }
 0x4f0   : > { %3293 = vst.msk [vmem:[%s5199_s20 + $0x58] sm:$0xff] %vm3281_vm11, %v3260_v4  ;;  %v3224_v20 = vsel %vm3215_vm9, %v3191_v19, %v1915_v8  ;;  %v3098_v10 = vpop.xlane.xlu0 %3097  ;;  %v1925_v29 = vadd.f32 %v5187_v34, %v5158_v32  ;;  %v1225_v15 = vadd.f32 %v5187_v34, %v5019_v18  ;;  %v1926_v4 = vadd.f32 %v5187_v34, %v5160_v33 }
 0x4f1   : > { %v3257_v9 = vsel %vm3248_vm10, %v3224_v20, 0.0  ;;  %v3192_v57 = vsel %vm3182_vm8, %v3159_v16, %v1215_v54  ;;  %v3164_v53 = vadd.f32 %v5187_v34, %v3098_v10  ;;  %v1222_v16 = vadd.f32 %v5187_v34, %v5028_v12 }
 0x4f2   : > { %3290 = vst.msk [vmem:[%s5199_s20 + $0x40] sm:$0xff] %vm3281_vm11, %v3257_v9  ;;  %v3225_v60 = vsel %vm3215_vm9, %v3192_v57, %v1916_v28  ;;  %v3101_v11 = vpop.xlane.xlu1 %3100  ;;  %v1923_v10 = vadd.f32 %v5187_v34, %v5162_v42  ;;  %v1223_v9 = vadd.f32 %v5187_v34, %v5033_v25 }
 0x4f3   : > { %v3258_v3 = vsel %vm3248_vm10, %v3225_v60, 0.0  ;;  %v3197_v59 = vsel %vm3182_vm8, %v3164_v53, %v1220_v56  ;;  %v3165_v58 = vadd.f32 %v5187_v34, %v3101_v11  ;;  %v1228_v11 = vadd.f32 %v5187_v34, %v5040_v46 }
 0x4f4   : > { %3291 = vst.msk [vmem:[%s5199_s20 + $0x48] sm:$0xff] %vm3281_vm11, %v3258_v3  ;;  %v3230_v22 = vsel %vm3215_vm9, %v3197_v59, %v1921_v5  ;;  %v3092_v63 = vpop.xlane.xlu0 %3091  ;;  %v1924_v5 = vadd.f32 %v5187_v34, %v5164_v44  ;;  %v1929_v59 = vadd.f32 %v5187_v34, %v5166_v61 }
 0x4f5   : > { %v3263_v17 = vsel %vm3248_vm10, %v3230_v22, 0.0  ;;  %v3198_v13 = vsel %vm3182_vm8, %v3165_v58, %v1221_v36  ;;  %v3162_v23 = vadd.f32 %v5187_v34, %v3092_v63 }
 0x4f6   : > { %3296 = vst.msk [vmem:[%s5199_s20 + $0x70] sm:$0xff] %vm3281_vm11, %v3263_v17  ;;  %v3231_v24 = vsel %vm3215_vm9, %v3198_v13, %v1922_v37  ;;  %v3095_v62 = vpop.xlane.xlu1 %3094  ;;  %v1229_v37 = vadd.f32 %v5187_v34, %v5046_v48  ;;  %v1226_v13 = vadd.f32 %v5187_v34, %v5053_v31 }
 0x4f7   : > { %v3264_v39 = vsel %vm3248_vm10, %v3231_v24, 0.0  ;;  %v3195_v52 = vsel %vm3182_vm8, %v3162_v23, %v1218_v21  ;;  %v3163_v43 = vadd.f32 %v5187_v34, %v3095_v62  ;;  %v1930_v21 = vadd.f32 %v5187_v34, %v5168_v7 }
 0x4f8   : > { %3297 = vst.msk [vmem:[%s5199_s20 + $0x78] sm:$0xff] %vm3281_vm11, %v3264_v39  ;;  %v3228_v41 = vsel %vm3215_vm9, %v3195_v52, %v1919_v51  ;;  %v3110_v38 = vpop.xlane.xlu0 %3109  ;;  %v1927_v24 = vadd.f32 %v5187_v34, %v5170_v0 }
 0x4f9   : > { %v3261_v45 = vsel %vm3248_vm10, %v3228_v41, 0.0  ;;  %v3196_v2 = vsel %vm3182_vm8, %v3163_v43, %v1219_v1  ;;  %v3168_v26 = vadd.f32 %v5187_v34, %v3110_v38  ;;  %v1227_v1 = vadd.f32 %v5187_v34, %v5058_v49 }
 0x4fa   : > { %3294 = vst.msk [vmem:[%s5199_s20 + $0x60] sm:$0xff] %vm3281_vm11, %v3261_v45  ;;  %v3229_v27 = vsel %vm3215_vm9, %v3196_v2, %v1920_v14  ;;  %v3113_v8 = vpop.xlane.xlu1 %3112  ;;  %v1928_v43 = vadd.f32 %v5187_v34, %v5172_v30  ;;  %v1232_v41 = vadd.f32 %v5187_v34, %v5067_v40  ;;  %v1933_v45 = vadd.f32 %v5187_v34, %v5174_v50 }
 0x4fb   : > { %v3262_v55 = vsel %vm3248_vm10, %v3229_v27, 0.0  ;;  %v3201_v47 = vsel %vm3182_vm8, %v3168_v26, %v1224_v6  ;;  %v3169_v54 = vadd.f32 %v5187_v34, %v3113_v8  ;;  %v1233_v26 = vadd.f32 %v5187_v34, %v5071_v35  ;;  %v5537_v8 = vld [vmem:[#allocation8_spill] sm:$0xff] }
 0x4fc   : > { %3295 = vst.msk [vmem:[%s5199_s20 + $0x68] sm:$0xff] %vm3281_vm11, %v3262_v55  ;;  %v3234_v32 = vsel %vm3215_vm9, %v3201_v47, %v1925_v29  ;;  %v3104_v19 = vpop.xlane.xlu0 %3103  ;;  %v5538_v47 = vld [vmem:[#allocation2_spill] sm:$0xff] }
 0x4fd   : > { %v3267_v18 = vsel %vm3248_vm10, %v3234_v32, 0.0  ;;  %v3202_v28 = vsel %vm3182_vm8, %v3169_v54, %v1225_v15  ;;  %v3166_v20 = vadd.f32 %v5187_v34, %v3104_v19  ;;  %v1934_v15 = vadd.f32 %v5187_v34, %v5537_v8  ;;  %v5539_v19 = vld [vmem:[#allocation9_spill] sm:$0xff] }
 0x4fe   : > { %3300 = vst.msk [vmem:[%s5199_s20 + $0x90] sm:$0xff] %vm3281_vm11, %v3267_v18  ;;  %v3235_v33 = vsel %vm3215_vm9, %v3202_v28, %v1926_v4  ;;  %v3107_v56 = vpop.xlane.xlu1 %3106  ;;  %v1230_v54 = vadd.f32 %v5187_v34, %v5538_v47 }
 0x4ff   : > { %v3268_v12 = vsel %vm3248_vm10, %v3235_v33, 0.0  ;;  %v3199_v57 = vsel %vm3182_vm8, %v3166_v20, %v1222_v16  ;;  %v3167_v53 = vadd.f32 %v5187_v34, %v3107_v56  ;;  %v1931_v16 = vadd.f32 %v5187_v34, %v5539_v19  ;;  %v5540_v20 = vld [vmem:[#allocation3_spill] sm:$0xff] }
 0x500   : > { %3301 = vst.msk [vmem:[%s5199_s20 + $0x98] sm:$0xff] %vm3281_vm11, %v3268_v12  ;;  %v3232_v42 = vsel %vm3215_vm9, %v3199_v57, %v1923_v10  ;;  %v3122_v60 = vpop.xlane.xlu0 %3121  ;;  %v1231_v10 = vadd.f32 %v5187_v34, %v5540_v20  ;;  %v5541_v12 = vld [vmem:[#allocation10_spill] sm:$0xff] }
 0x501   : > { %v3265_v25 = vsel %vm3248_vm10, %v3232_v42, 0.0  ;;  %v3200_v36 = vsel %vm3182_vm8, %v3167_v53, %v1223_v9  ;;  %v3172_v3 = vadd.f32 %v5187_v34, %v3122_v60  ;;  %v1932_v57 = vadd.f32 %v5187_v34, %v5541_v12 }
 0x502   : > { %3298 = vst.msk [vmem:[%s5199_s20 + $0x80] sm:$0xff] %vm3281_vm11, %v3265_v25  ;;  %v3233_v44 = vsel %vm3215_vm9, %v3200_v36, %v1924_v5  ;;  %v3125_v58 = vpop.xlane.xlu1 %3124  ;;  %v5542_v36 = vld [vmem:[#allocation5_spill] sm:$0xff] }
 0x503   : > { %v3266_v46 = vsel %vm3248_vm10, %v3233_v44, 0.0  ;;  %v3205_v22 = vsel %vm3182_vm8, %v3172_v3, %v1228_v11  ;;  %v3173_v63 = vadd.f32 %v5187_v34, %v3125_v58  ;;  %v1237_v3 = vadd.f32 %v5187_v34, %v5542_v36 }
 0x504   : > { %3299 = vst.msk [vmem:[%s5199_s20 + $0x88] sm:$0xff] %vm3281_vm11, %v3266_v46  ;;  %v3238_v61 = vsel %vm3215_vm9, %v3205_v22, %v1929_v59  ;;  %v3116_v17 = vpop.xlane.xlu0 %3115 }
 0x505   : > { %v3271_v48 = vsel %vm3248_vm10, %v3238_v61, 0.0  ;;  %v3206_v23 = vsel %vm3182_vm8, %v3173_v63, %v1229_v37  ;;  %v3170_v51 = vadd.f32 %v5187_v34, %v3116_v17  ;;  %v5543_v37 = vld [vmem:[#allocation6_spill] sm:$0xff] }
 0x506   : > { %3304 = vst.msk [vmem:[%s5199_s20 + $0xb0] sm:$0xff] %vm3281_vm11, %v3271_v48  ;;  %v3239_v7 = vsel %vm3215_vm9, %v3206_v23, %v1930_v21  ;;  %v3119_v62 = vpop.xlane.xlu1 %3118  ;;  %v1234_v46 = vadd.f32 %v5187_v34, %v5543_v37  ;;  %v5544_v21 = vld [vmem:[#allocation11_spill] sm:$0xff] }
 0x507   : > { %v3272_v31 = vsel %vm3248_vm10, %v3239_v7, 0.0  ;;  %v3203_v39 = vsel %vm3182_vm8, %v3170_v51, %v1226_v13  ;;  %v3171_v52 = vadd.f32 %v5187_v34, %v3119_v62  ;;  %v1935_v61 = vadd.f32 %v5187_v34, %v5544_v21  ;;  %v5545_v48 = vld [vmem:[#allocation7_spill] sm:$0xff]  ;;  %v5546_v7 = vld [vmem:[#allocation4_spill] sm:$0xff] }
 0x508   : > { %3305 = vst.msk [vmem:[%s5199_s20 + $0xb8] sm:$0xff] %vm3281_vm11, %v3272_v31  ;;  %v3236_v0 = vsel %vm3215_vm9, %v3203_v39, %v1927_v24  ;;  %v3134_v14 = vpop.xlane.xlu0 %3133  ;;  %v1235_v23 = vadd.f32 %v5187_v34, %v5545_v48  ;;  %v1236_v62 = vadd.f32 %v5187_v34, %v5546_v7 }
 0x509   : > { %v3269_v49 = vsel %vm3248_vm10, %v3236_v0, 0.0  ;;  %v3204_v38 = vsel %vm3182_vm8, %v3171_v52, %v1227_v1  ;;  %v3176_v6 = vadd.f32 %v5187_v34, %v3134_v14  ;;  %v5547_v1 = vld [vmem:[#allocation12_spill] sm:$0xff] }
 0x50a   : > { %3302 = vst.msk [vmem:[%s5199_s20 + $0xa0] sm:$0xff] %vm3281_vm11, %v3269_v49  ;;  %v3237_v30 = vsel %vm3215_vm9, %v3204_v38, %v1928_v43  ;;  %v3137_v2 = vpop.xlane.xlu1 %3136  ;;  %v1936_v31 = vadd.f32 %v5187_v34, %v5547_v1 }
 0x50b   : > { %v3270_v40 = vsel %vm3248_vm10, %v3237_v30, 0.0  ;;  %v3209_v29 = vsel %vm3182_vm8, %v3176_v6, %v1232_v41  ;;  %v3177_v27 = vadd.f32 %v5187_v34, %v3137_v2 }
 0x50c   : > { %3303 = vst.msk [vmem:[%s5199_s20 + $0xa8] sm:$0xff] %vm3281_vm11, %v3270_v40  ;;  %v3242_v50 = vsel %vm3215_vm9, %v3209_v29, %v1933_v45  ;;  %v3128_v55 = vpop.xlane.xlu0 %3127 }
 0x50d   : > { %v3275_v35 = vsel %vm3248_vm10, %v3242_v50, 0.0  ;;  %v3210_v4 = vsel %vm3182_vm8, %v3177_v27, %v1233_v26  ;;  %v3174_v32 = vadd.f32 %v5187_v34, %v3128_v55 }
 0x50e   : > { %3308 = vst.msk [vmem:[%s5199_s20 + $0xd0] sm:$0xff] %vm3281_vm11, %v3275_v35  ;;  %v3243_v18 = vsel %vm3215_vm9, %v3210_v4, %v1934_v15  ;;  %v3131_v28 = vpop.xlane.xlu1 %3130 }
 0x50f   : > { %v3276_v33 = vsel %vm3248_vm10, %v3243_v18, 0.0  ;;  %v3207_v56 = vsel %vm3182_vm8, %v3174_v32, %v1230_v54  ;;  %v3175_v9 = vadd.f32 %v5187_v34, %v3131_v28 }
 0x510   : > { %3309 = vst.msk [vmem:[%s5199_s20 + $0xd8] sm:$0xff] %vm3281_vm11, %v3276_v33  ;;  %v3240_v53 = vsel %vm3215_vm9, %v3207_v56, %v1931_v16  ;;  %v3146_v5 = vpop.xlane.xlu0 %3145 }
 0x511   : > { %v3273_v42 = vsel %vm3248_vm10, %v3240_v53, 0.0  ;;  %v3208_v60 = vsel %vm3182_vm8, %v3175_v9, %v1231_v10  ;;  %v3180_v17 = vadd.f32 %v5187_v34, %v3146_v5 }
 0x512   : > { %3306 = vst.msk [vmem:[%s5199_s20 + $0xc0] sm:$0xff] %vm3281_vm11, %v3273_v42  ;;  %v3241_v11 = vsel %vm3215_vm9, %v3208_v60, %v1932_v57  ;;  %v3149_v25 = vpop.xlane.xlu1 %3148 }
 0x513   : > { %v3274_v59 = vsel %vm3248_vm10, %v3241_v11, 0.0  ;;  %v3181_v44 = vadd.f32 %v5187_v34, %v3149_v25  ;;  %v3213_v41 = vsel %vm3182_vm8, %v3180_v17, %v1236_v62 }
 0x514   : > { %3307 = vst.msk [vmem:[%s5199_s20 + $0xc8] sm:$0xff] %vm3281_vm11, %v3274_v59  ;;  %v3140_v58 = vpop.xlane.xlu0 %3139 }
 0x515   : > { %v3214_v22 = vsel %vm3182_vm8, %v3181_v44, %v1237_v3  ;;  %v3178_v63 = vadd.f32 %v5187_v34, %v3140_v58 }
 0x516   : > { %v3143_v13 = vpop.xlane.xlu1 %3142 }
 0x517   : > { %v3211_v51 = vsel %vm3182_vm8, %v3178_v63, %v1234_v46  ;;  %v3179_v24 = vadd.f32 %v5187_v34, %v3143_v13 }
 0x518   : > { %v3244_v39 = vsel %vm3215_vm9, %v3211_v51, %v1935_v61  ;;  %v1903_v52 = vpop.xlane.xlu0 %1902 }
 0x519   : > { %v3277_v43 = vsel %vm3248_vm10, %v3244_v39, 0.0  ;;  %v3212_v0 = vsel %vm3182_vm8, %v3179_v24, %v1235_v23  ;;  %v1937_v14 = vadd.f32 %v5187_v34, %v1903_v52 }
 0x51a   : > { %3310 = vst.msk [vmem:[%s5199_s20 + $0xe0] sm:$0xff] %vm3281_vm11, %v3277_v43  ;;  %v3245_v49 = vsel %vm3215_vm9, %v3212_v0, %v1936_v31  ;;  %v1906_v38 = vpop.xlane.xlu1 %1905 }
 0x51b   : > { %v3278_v6 = vsel %vm3248_vm10, %v3245_v49, 0.0  ;;  %v3246_v45 = vsel %vm3215_vm9, %v3213_v41, %v1937_v14  ;;  %v1938_v30 = vadd.f32 %v5187_v34, %v1906_v38 }
 0x51c   : > { %3311 = vst.msk [vmem:[%s5199_s20 + $0xe8] sm:$0xff] %vm3281_vm11, %v3278_v6  ;;  %v3279_v2 = vsel %vm3248_vm10, %v3246_v45, 0.0 }
 0x51d   : > { %3312 = vst.msk [vmem:[%s5199_s20 + $0xf0] sm:$0xff] %vm3281_vm11, %v3279_v2  ;;  %v3247_v26 = vsel %vm3215_vm9, %v3214_v22, %v1938_v30 }
 0x51e   : > { %v3280_v40 = vsel %vm3248_vm10, %v3247_v26, 0.0 }
 0x51f   : > { %3313 = vst.msk [vmem:[%s5199_s20 + $0xf8] sm:$0xff] %vm3281_vm11, %v3280_v40 }
 0x520 PF: > { %s20_s13 = sadd.s32 1, %s4195_s13  }
 0x521   : > { %p17_p4 = scmp.ge.s32.totalorder %s20_s13, 4  }
 0x523   :  { %19 = sbr.rel (!%p17_p4) target bundleno = 1 (0x1), region = 90 }

</bundles_post_ra>
